<compile_context>
chip_gen: v6e
topology: v6e:2x2x1
jax: 0.10.0
libtpu: 0.0.40
codegen_flags: <defaults>
</compile_context>

<pallas_src>
import functools

import jax
import jax.numpy as jnp
from jax.experimental import pallas as pl
from jax.experimental.pallas import tpu as pltpu


def _round_up(x, m):
    return ((x + m - 1) // m) * m


# ----------------------------------------------------------------------------
# Pallas recurrent kernel: one (batch-tile, time-chunk) block per grid step;
# hidden state carried across time chunks in a VMEM scratch.
# ----------------------------------------------------------------------------
def gru_kernel(gates_ref, whh_ref, bhn_ref, out_ref, hn_ref, h_scr,
               *, t_total, t_chunk, hidden_size, needs_mask):
    c = pl.program_id(1)                 # time-chunk index (sequential axis)
    last_c = pl.num_programs(1) - 1

    @pl.when(c == 0)
    def _():
        h_scr[...] = jnp.zeros_like(h_scr)

    H = hidden_size                       # lane-padded hidden size
    w = whh_ref[...]                      # (H, 3H), loaded once per chunk
    # Hoisted broadcast (JAX does not CSE broadcast_in_dim inside the loop).
    b_hn = jnp.broadcast_to(bhn_ref[...], h_scr.shape)   # (Tb, H) f32

    unroll = True if t_chunk <= 32 else 8

    def make_step(masked):
        n_valid = t_total - c * t_chunk   # only used on the masked (last) chunk

        def step(t, h):
            gi = gates_ref[t].astype(jnp.float32)               # (Tb, 3H)
            hg = jnp.dot(h.astype(w.dtype), w,
                         preferred_element_type=jnp.float32)    # (Tb, 3H)
            # PyTorch GRU gate order in the fused lane dim: [r, z, n]
            r = jax.nn.sigmoid(gi[:, 0:H] + hg[:, 0:H])
            z = jax.nn.sigmoid(gi[:, H:2 * H] + hg[:, H:2 * H])
            n = jnp.tanh(gi[:, 2 * H:] + r * (hg[:, 2 * H:] + b_hn))
            h_new = (1.0 - z) * n + z * h
            if masked:
                # Padded tail steps (T not a multiple of Tc) must not change h.
                h_new = jnp.where(t < n_valid, h_new, h)
            # Batch-major store: no wrapper-side HBM transpose pass afterwards.
            out_ref[:, t, :] = h_new.astype(out_ref.dtype)
            return h_new

        return step

    def run(masked):
        h_last = jax.lax.fori_loop(0, t_chunk, make_step(masked), h_scr[...],
                                   unroll=unroll)
        h_scr[...] = h_last

    if needs_mask:
        # Only the last chunk carries padded steps -> keep the `where` off the
        # hot path of every other chunk.
        @pl.when(c == last_c)
        def _():
            run(True)

        @pl.when(c != last_c)
        def _():
            run(False)
    else:
        run(False)

    @pl.when(c == last_c)
    def _():
        hn_ref[...] = h_scr[...].astype(hn_ref.dtype)


def gru_pallas(gates, w_hh, b_hn, *, t_total, t_chunk, batch_tile, hidden_size,
               needs_mask, vmem_limit_bytes):
    """gates: (T_pad, B_pad, 3H) precomputed input gates (time-major, f32/bf16).

    Returns (out (B_pad, T_pad, H) f32 batch-major, h_n (B_pad, H) f32).
    """
    t_pad, b_pad, G = gates.shape
    Hp = hidden_size
    assert G == 3 * Hp
    assert t_pad % t_chunk == 0 and b_pad % batch_tile == 0

    num_bt = b_pad // batch_tile
    num_tc = t_pad // t_chunk

    kernel = functools.partial(gru_kernel, t_total=t_total, t_chunk=t_chunk,
                               hidden_size=Hp, needs_mask=needs_mask)

    grid_spec = pltpu.PrefetchScalarGridSpec(
        num_scalar_prefetch=0,
        grid=(num_bt, num_tc),
        in_specs=[
            pl.BlockSpec((t_chunk, batch_tile, 3 * Hp), lambda bt, c: (c, bt, 0)),
            # W_hh / b_hn blocks are constant across the whole grid.  On very
            # large H they could be single-buffered (pipeline_mode=pl.Buffered(1))
            # to reclaim Hp*3Hp*itemsize of VMEM; left default-buffered here.
            pl.BlockSpec((Hp, 3 * Hp), lambda bt, c: (0, 0)),
            pl.BlockSpec((1, Hp), lambda bt, c: (0, 0)),
        ],
        out_specs=[
            # Batch-major output written directly by the kernel.
            pl.BlockSpec((batch_tile, t_chunk, Hp), lambda bt, c: (bt, c, 0)),
            pl.BlockSpec((batch_tile, Hp), lambda bt, c: (bt, 0)),
        ],
        scratch_shapes=[pltpu.VMEM((batch_tile, Hp), jnp.float32)],
    )

    return pl.pallas_call(
        kernel,
        out_shape=(
            jax.ShapeDtypeStruct((b_pad, t_pad, Hp), jnp.float32),
            jax.ShapeDtypeStruct((b_pad, Hp), jnp.float32),
        ),
        grid_spec=grid_spec,
        compiler_params=pltpu.CompilerParams(
            # Batch tiles are independent (megacore on v7x); the time
            # recurrence must stay sequential.
            dimension_semantics=("parallel", "arbitrary"),
            vmem_limit_bytes=vmem_limit_bytes),
    )(gates, w_hh, b_hn)


# ----------------------------------------------------------------------------
# Parameters (PyTorch layout) + kernel-layout preparation (lane padding etc.)
# ----------------------------------------------------------------------------
def init_params(key, vocab_size, embedding_size, hidden_size, padding_idx=3):
    ks = jax.random.split(key, 5)
    k = 1.0 / jnp.sqrt(hidden_size)
    emb = jax.random.normal(ks[0], (vocab_size, embedding_size), jnp.float32)
    emb = emb.at[padding_idx].set(0.0)  # nn.Embedding(padding_idx=...) zero row

    # PyTorch nn.GRU parameter shapes (gate order [r, z, n]):
    #   weight_ih (3H, E), weight_hh (3H, H), biases (3H,)
    w_ih = jax.random.uniform(ks[1], (3 * hidden_size, embedding_size),
                              jnp.float32, -k, k)
    w_hh = jax.random.uniform(ks[2], (3 * hidden_size, hidden_size),
                              jnp.float32, -k, k)
    b_ih = jax.random.uniform(ks[3], (3 * hidden_size,), jnp.float32, -k, k)
    b_hh = jax.random.uniform(ks[4], (3 * hidden_size,), jnp.float32, -k, k)
    return dict(emb=emb, w_ih=w_ih, w_hh=w_hh, b_ih=b_ih, b_hh=b_hh)


def prepare_kernel_params(params, hidden_size, matmul_dtype=jnp.float32):
    """Re-layout PyTorch params for the fused Pallas kernel.

    The hidden size is lane-padded to a multiple of 128 *per gate*; padded
    weight rows/columns and bias entries are zero, which keeps the padded
    hidden columns exactly zero throughout the recurrence.

    NOTE: matmul_dtype=jnp.bfloat16 is the recommended setting on real
    v6e/v7x hardware (bf16 MXU, halved weight DMA).  The self-test sticks to
    f32 matmuls because the sandbox backend rejects bf16 x bf16 -> f32 dots.
    """
    H = hidden_size
    Hp = _round_up(H, 128)
    pad = Hp - H
    E = params["w_ih"].shape[1]

    # (E, 3H) -> per-gate lane padding -> (E, 3Hp), columns [r | z | n]
    w_ih_f = params["w_ih"].T.reshape(E, 3, H)
    w_ih_f = jnp.pad(w_ih_f, ((0, 0), (0, 0), (0, pad))).reshape(E, 3 * Hp)
    w_ih_f = w_ih_f.astype(matmul_dtype)

    # (H, 3H) -> pad contraction rows to Hp and each gate's columns to Hp.
    w_hh_f = params["w_hh"].T.reshape(H, 3, H)
    w_hh_f = jnp.pad(w_hh_f, ((0, pad), (0, 0), (0, pad))).reshape(Hp, 3 * Hp)
    w_hh_f = w_hh_f.astype(matmul_dtype)

    # b_ih + b_hh[r], b_hh[z] fold into the precomputed input gates; b_hh[n]
    # must stay separate (it is multiplied by r inside the kernel).
    gates_bias = params["b_ih"] + jnp.concatenate(
        [params["b_hh"][:2 * H], jnp.zeros((H,), jnp.float32)])
    gates_bias = jnp.pad(gates_bias.reshape(3, H),
                         ((0, 0), (0, pad))).reshape(3 * Hp)

    b_hn = jnp.pad(params["b_hh"][2 * H:], (0, pad)).reshape(1, Hp)

    return dict(emb=params["emb"], w_ih_f=w_ih_f, w_hh_f=w_hh_f,
                gates_bias=gates_bias, b_hn=b_hn, hidden_size=H)


# ----------------------------------------------------------------------------
# VMEM-budget-driven time-chunk selection
# ----------------------------------------------------------------------------
def _pick_t_chunk(t_req, t_total, batch_tile, hp, gates_itemsize, w_itemsize,
                  budget_bytes):
    tc = _round_up(max(1, min(t_req, t_total)), 8)

    def footprint(tc_):
        gates_blk = 2 * tc_ * batch_tile * 3 * hp * gates_itemsize  # dbl-buffered
        out_blk = 2 * batch_tile * tc_ * hp * 4                     # dbl-buffered
        weights = 2 * (hp * 3 * hp + hp) * w_itemsize               # W_hh + b_hn
        hn_blk = 2 * batch_tile * hp * 4
        scratch = batch_tile * hp * 4
        return gates_blk + out_blk + weights + hn_blk + scratch

    while tc > 8 and footprint(tc) > budget_bytes:
        tc = _round_up(tc // 2, 8)
    return tc


# ----------------------------------------------------------------------------
# Encoder forward (eval mode)
# ----------------------------------------------------------------------------
def encoder_forward(kparams, source, mask, hidden=None, *,
                    t_chunk=128, batch_tile=None,
                    gates_dtype=jnp.bfloat16,
                    vmem_budget_bytes=40 * 1024 * 1024,
                    vmem_limit_bytes=48 * 1024 * 1024):
    """source: (B, T) int32 token ids. Returns (output (B,T,H), hidden (1,B,H))."""
    del mask, hidden  # mask unused by reference forward; initial hidden = zeros
    emb = kparams["emb"][source]                 # (B, T, E) -- glue gather
    B, T, _ = emb.shape
    H = kparams["hidden_size"]
    Hp = kparams["b_hn"].shape[-1]
    w_ih = kparams["w_ih_f"]

    # Input projection hoisted out of the recurrence: one big GEMM over all
    # T*B tokens, emitted directly time-major (no separate transpose pass).
    gates = jnp.einsum("bte,eg->tbg", emb.astype(w_ih.dtype), w_ih,
                       preferred_element_type=jnp.float32)
    # Store the gates slab (dominant HBM stream) in `gates_dtype` (bf16 by
    # default: halves the DMA traffic and the gates VMEM block).
    gates = (gates + kparams["gates_bias"][None, None, :]).astype(gates_dtype)

    # Batch padding to a sublane multiple so the (Tb, 3Hp) blocks are dense.
    sub = 16 if jnp.dtype(gates_dtype).itemsize == 2 else 8
    b_pad = _round_up(B, sub)
    if batch_tile is None:
        # v5e/v6e (single TC): one big batch tile.  On v7x pass
        # batch_tile <= b_pad // 2 so the "parallel" axis spans both cores.
        tb = b_pad
    else:
        tb = min(_round_up(batch_tile, sub), b_pad)
        while b_pad % tb:
            tb += sub

    tc = _pick_t_chunk(t_chunk, T, tb, Hp,
                       jnp.dtype(gates_dtype).itemsize,
                       jnp.dtype(kparams["w_hh_f"].dtype).itemsize,
                       vmem_budget_bytes)
    t_pad = pl.cdiv(T, tc) * tc

    if t_pad != T or b_pad != B:
        gates = jnp.pad(gates, ((0, t_pad - T), (0, b_pad - B), (0, 0)))

    out, h_n = gru_pallas(gates, kparams["w_hh_f"], kparams["b_hn"],
                          t_total=T, t_chunk=tc, batch_tile=tb,
                          hidden_size=Hp, needs_mask=(t_pad != T),
                          vmem_limit_bytes=vmem_limit_bytes)

    # Output is already batch-major (B_pad, T_pad, Hp); just slice off padding.
    output = out[:B, :T, :H]
    # SpatialDropout in eval mode == identity.
    return output, h_n[:B, :H][None, :, :]          # hidden: (1, B, H)


# ----------------------------------------------------------------------------
# Pure-JAX reference (PyTorch GRU semantics, lax.scan) for correctness checks
# ----------------------------------------------------------------------------
def encoder_reference(params, source):
    emb = params["emb"][source]                      # (B, T, E)
    B = emb.shape[0]
    H = params["w_hh"].shape[1]
    w_ih, w_hh = params["w_ih"], params["w_hh"]
    b_ih, b_hh = params["b_ih"], params["b_hh"]

    def step(h, x_t):
        gi = x_t @ w_ih.T + b_ih                     # (B, 3H)
        gh = h @ w_hh.T + b_hh                       # (B, 3H)
        r = jax.nn.sigmoid(gi[:, :H] + gh[:, :H])
        z = jax.nn.sigmoid(gi[:, H:2 * H] + gh[:, H:2 * H])
        n = jnp.tanh(gi[:, 2 * H:] + r * gh[:, 2 * H:])
        h_new = (1.0 - z) * n + z * h
        return h_new, h_new

    x_tbe = jnp.transpose(emb, (1, 0, 2))
    h_last, outs = jax.lax.scan(step, jnp.zeros((B, H), jnp.float32), x_tbe)
    return jnp.transpose(outs, (1, 0, 2)), h_last[None]


if __name__ == "__main__":
    vocab_size, embedding_size, hidden_size = 11, 16, 32
    padding_idx = 3

    key = jax.random.PRNGKey(0)
    k_param, k_src1, k_src2 = jax.random.split(key, 3)
    params = init_params(k_param, vocab_size, embedding_size, hidden_size,
                         padding_idx)
    # f32 matmuls for the self-test (portable everywhere); use
    # matmul_dtype=jnp.bfloat16 on real v6e/v7x hardware.
    kp = prepare_kernel_params(params, hidden_size, matmul_dtype=jnp.float32)

    # ---- test 1: B=2, T=8 -- f32 gates, single chunk, strict check --------
    B, T = 2, 8
    source = jax.random.randint(k_src1, (B, T), 0, vocab_size, dtype=jnp.int32)
    mask = (source != padding_idx).astype(jnp.float32)
    ref_out, ref_hid = encoder_reference(params, source)

    out32, hid32 = jax.block_until_ready(
        encoder_forward(kp, source, mask, gates_dtype=jnp.float32))
    assert out32.shape == (B, T, hidden_size)
    assert hid32.shape == (1, B, hidden_size)
    assert jnp.allclose(out32, ref_out, atol=1e-4, rtol=1e-4)
    assert jnp.allclose(hid32, ref_hid, atol=1e-4, rtol=1e-4)

    # ---- test 2: bf16 gates storage path -- loose check --------------------
    outbf, hidbf = jax.block_until_ready(
        encoder_forward(kp, source, mask, gates_dtype=jnp.bfloat16))
    assert jnp.allclose(outbf, ref_out, atol=5e-2, rtol=5e-2)
    assert jnp.allclose(hidbf, ref_hid, atol=5e-2, rtol=5e-2)

    # ---- test 3: multi-chunk + padded time tail + 2 batch tiles ------------
    B2, T2 = 16, 12
    source2 = jax.random.randint(k_src2, (B2, T2), 0, vocab_size,
                                 dtype=jnp.int32)
    mask2 = (source2 != padding_idx).astype(jnp.float32)
    ref_out2, ref_hid2 = encoder_reference(params, source2)
    out2, hid2 = jax.block_until_ready(
        encoder_forward(kp, source2, mask2, gates_dtype=jnp.float32,
                        t_chunk=8, batch_tile=8))
    assert jnp.allclose(out2, ref_out2, atol=1e-4, rtol=1e-4)
    assert jnp.allclose(hid2, ref_hid2, atol=1e-4, rtol=1e-4)

    print("KERNEL_OK")
</pallas_src>

<mosaic_0001>
module attributes {stable_mosaic.version = 11 : i64} {
  func.func @gru_kernel(%arg0: i32, %arg1: i32, %arg2: memref<8x8x384xf32, #tpu.memory_space<vmem>>, %arg3: memref<128x384xf32, #tpu.memory_space<vmem>>, %arg4: memref<1x128xf32, #tpu.memory_space<vmem>>, %arg5: memref<8x8x128xf32, #tpu.memory_space<vmem>>, %arg6: memref<8x128xf32, #tpu.memory_space<vmem>>, %arg7: memref<8x128xf32, #tpu.memory_space<vmem>>) attributes {dimension_semantics = [#tpu.dimension_semantics<parallel>, #tpu.dimension_semantics<arbitrary>], iteration_bounds = array<i64: 1, 1>, scalar_prefetch = 0 : i64, scratch_operands = 1 : i64, tpu.core_type = #tpu.core_type<tc>, window_params = [{transform_indices = @transform_0, window_bounds = array<i64: 8, 8, 384>}, {pipeline_mode = #tpu.pipeline_mode<synchronous>, transform_indices = @transform_1, window_bounds = array<i64: 128, 384>}, {pipeline_mode = #tpu.pipeline_mode<synchronous>, transform_indices = @transform_2, window_bounds = array<i64: 1, 128>}, {transform_indices = @transform_3, window_bounds = array<i64: 8, 8, 128>}, {transform_indices = @transform_4, window_bounds = array<i64: 8, 128>}]} {
    %c0_i32 = arith.constant 0 : i32
    %0 = arith.cmpi eq, %arg1, %c0_i32 : i32
    %1 = arith.extui %0 : i1 to i32
    %c0_i32_0 = arith.constant 0 : i32
    %2 = arith.cmpi ne, %1, %c0_i32_0 : i32
    scf.if %2 {
      %cst_74 = arith.constant 0.000000e+00 : f32
      %292 = vector.broadcast %cst_74 : f32 to vector<8x128xf32>
      %c0_75 = arith.constant 0 : index
      %c0_76 = arith.constant 0 : index
      %293 = vector.load %arg7[%c0_75, %c0_76] : memref<8x128xf32, #tpu.memory_space<vmem>>, vector<8x128xf32>
      tpu.vector_store %arg7[%c0_75, %c0_76], %292 {strides = array<i32>} : memref<8x128xf32, #tpu.memory_space<vmem>>, vector<8x128xf32>,
    } else {
    }
    %c0 = arith.constant 0 : index
    %c0_1 = arith.constant 0 : index
    %3 = vector.load %arg3[%c0, %c0_1] : memref<128x384xf32, #tpu.memory_space<vmem>>, vector<128x384xf32>
    %c0_2 = arith.constant 0 : index
    %c0_3 = arith.constant 0 : index
    %4 = vector.load %arg4[%c0_2, %c0_3] : memref<1x128xf32, #tpu.memory_space<vmem>>, vector<1x128xf32>
    %5 = vector.shape_cast %4 : vector<1x128xf32> to vector<1x128xf32>
    %6 = vector.broadcast %5 : vector<1x128xf32> to vector<8x128xf32>
    %c0_4 = arith.constant 0 : index
    %c0_5 = arith.constant 0 : index
    %7 = vector.load %arg7[%c0_4, %c0_5] : memref<8x128xf32, #tpu.memory_space<vmem>>, vector<8x128xf32>
    %c0_i32_6 = arith.constant 0 : i32
    %8 = arith.index_cast %c0_i32_6 : i32 to index
    %c0_7 = arith.constant 0 : index
    %c0_8 = arith.constant 0 : index
    %9 = vector.load %arg2[%8, %c0_7, %c0_8] : memref<8x8x384xf32, #tpu.memory_space<vmem>>, vector<1x8x384xf32>
    %10 = vector.shape_cast %9 : vector<1x8x384xf32> to vector<8x384xf32>
    %cst = arith.constant dense<0.000000e+00> : vector<8x384xf32>
    %11 = tpu.matmul %7, %3, %cst {dimension_numbers = #tpu.dot_dimension_numbers<[1], [0], [0], [1], [0, 0, 1, 1], [], []>} : vector<8x128xf32>, vector<128x384xf32>, vector<8x384xf32> -> vector<8x384xf32>
    %12 = vector.extract_strided_slice %10 {offsets = [0, 0], sizes = [8, 128], strides = [1, 1]} : vector<8x384xf32> to vector<8x128xf32>
    %13 = vector.extract_strided_slice %11 {offsets = [0, 0], sizes = [8, 128], strides = [1, 1]} : vector<8x384xf32> to vector<8x128xf32>
    %14 = arith.addf %12, %13 : vector<8x128xf32>
    %15 = arith.negf %14 : vector<8x128xf32>
    %16 = math.exp %15 : vector<8x128xf32>
    %cst_9 = arith.constant 1.000000e+00 : f32
    %17 = vector.broadcast %cst_9 : f32 to vector<8x128xf32>
    %18 = arith.addf %17, %16 : vector<8x128xf32>
    %19 = arith.divf %17, %18 : vector<8x128xf32>
    %20 = vector.extract_strided_slice %10 {offsets = [0, 128], sizes = [8, 128], strides = [1, 1]} : vector<8x384xf32> to vector<8x128xf32>
    %21 = vector.extract_strided_slice %11 {offsets = [0, 128], sizes = [8, 128], strides = [1, 1]} : vector<8x384xf32> to vector<8x128xf32>
    %22 = arith.addf %20, %21 : vector<8x128xf32>
    %23 = arith.negf %22 : vector<8x128xf32>
    %24 = math.exp %23 : vector<8x128xf32>
    %cst_10 = arith.constant 1.000000e+00 : f32
    %25 = vector.broadcast %cst_10 : f32 to vector<8x128xf32>
    %26 = arith.addf %25, %24 : vector<8x128xf32>
    %27 = arith.divf %25, %26 : vector<8x128xf32>
    %28 = vector.extract_strided_slice %10 {offsets = [0, 256], sizes = [8, 128], strides = [1, 1]} : vector<8x384xf32> to vector<8x128xf32>
    %29 = vector.extract_strided_slice %11 {offsets = [0, 256], sizes = [8, 128], strides = [1, 1]} : vector<8x384xf32> to vector<8x128xf32>
    %30 = arith.addf %29, %6 : vector<8x128xf32>
    %31 = arith.mulf %19, %30 : vector<8x128xf32>
    %32 = arith.addf %28, %31 : vector<8x128xf32>
    %33 = math.tanh %32 : vector<8x128xf32>
    %cst_11 = arith.constant 1.000000e+00 : f32
    %34 = vector.broadcast %cst_11 : f32 to vector<8x128xf32>
    %35 = arith.subf %34, %27 : vector<8x128xf32>
    %36 = arith.mulf %35, %33 : vector<8x128xf32>
    %37 = arith.mulf %27, %7 : vector<8x128xf32>
    %38 = arith.addf %36, %37 : vector<8x128xf32>
    %c0_12 = arith.constant 0 : index
    %39 = arith.index_cast %c0_i32_6 : i32 to index
    %c0_13 = arith.constant 0 : index
    %40 = vector.load %arg5[%c0_12, %39, %c0_13] : memref<8x8x128xf32, #tpu.memory_space<vmem>>, vector<8x1x128xf32>
    %41 = vector.shape_cast %40 : vector<8x1x128xf32> to vector<8x128xf32>
    %42 = vector.shape_cast %38 : vector<8x128xf32> to vector<8x1x128xf32>
    tpu.vector_store %arg5[%c0_12, %39, %c0_13], %42 {strides = array<i32>} : memref<8x8x128xf32, #tpu.memory_space<vmem>>, vector<8x1x128xf32>,
    %c1_i32 = arith.constant 1 : i32
    %43 = arith.index_cast %c1_i32 : i32 to index
    %c0_14 = arith.constant 0 : index
    %c0_15 = arith.constant 0 : index
    %44 = vector.load %arg2[%43, %c0_14, %c0_15] : memref<8x8x384xf32, #tpu.memory_space<vmem>>, vector<1x8x384xf32>
    %45 = vector.shape_cast %44 : vector<1x8x384xf32> to vector<8x384xf32>
    %cst_16 = arith.constant dense<0.000000e+00> : vector<8x384xf32>
    %46 = tpu.matmul %38, %3, %cst_16 {dimension_numbers = #tpu.dot_dimension_numbers<[1], [0], [0], [1], [0, 0, 1, 1], [], []>} : vector<8x128xf32>, vector<128x384xf32>, vector<8x384xf32> -> vector<8x384xf32>
    %47 = vector.extract_strided_slice %45 {offsets = [0, 0], sizes = [8, 128], strides = [1, 1]} : vector<8x384xf32> to vector<8x128xf32>
    %48 = vector.extract_strided_slice %46 {offsets = [0, 0], sizes = [8, 128], strides = [1, 1]} : vector<8x384xf32> to vector<8x128xf32>
    %49 = arith.addf %47, %48 : vector<8x128xf32>
    %50 = arith.negf %49 : vector<8x128xf32>
    %51 = math.exp %50 : vector<8x128xf32>
    %cst_17 = arith.constant 1.000000e+00 : f32
    %52 = vector.broadcast %cst_17 : f32 to vector<8x128xf32>
    %53 = arith.addf %52, %51 : vector<8x128xf32>
    %54 = arith.divf %52, %53 : vector<8x128xf32>
    %55 = vector.extract_strided_slice %45 {offsets = [0, 128], sizes = [8, 128], strides = [1, 1]} : vector<8x384xf32> to vector<8x128xf32>
    %56 = vector.extract_strided_slice %46 {offsets = [0, 128], sizes = [8, 128], strides = [1, 1]} : vector<8x384xf32> to vector<8x128xf32>
    %57 = arith.addf %55, %56 : vector<8x128xf32>
    %58 = arith.negf %57 : vector<8x128xf32>
    %59 = math.exp %58 : vector<8x128xf32>
    %cst_18 = arith.constant 1.000000e+00 : f32
    %60 = vector.broadcast %cst_18 : f32 to vector<8x128xf32>
    %61 = arith.addf %60, %59 : vector<8x128xf32>
    %62 = arith.divf %60, %61 : vector<8x128xf32>
    %63 = vector.extract_strided_slice %45 {offsets = [0, 256], sizes = [8, 128], strides = [1, 1]} : vector<8x384xf32> to vector<8x128xf32>
    %64 = vector.extract_strided_slice %46 {offsets = [0, 256], sizes = [8, 128], strides = [1, 1]} : vector<8x384xf32> to vector<8x128xf32>
    %65 = arith.addf %64, %6 : vector<8x128xf32>
    %66 = arith.mulf %54, %65 : vector<8x128xf32>
    %67 = arith.addf %63, %66 : vector<8x128xf32>
    %68 = math.tanh %67 : vector<8x128xf32>
    %cst_19 = arith.constant 1.000000e+00 : f32
    %69 = vector.broadcast %cst_19 : f32 to vector<8x128xf32>
    %70 = arith.subf %69, %62 : vector<8x128xf32>
    %71 = arith.mulf %70, %68 : vector<8x128xf32>
    %72 = arith.mulf %62, %38 : vector<8x128xf32>
    %73 = arith.addf %71, %72 : vector<8x128xf32>
    %c0_20 = arith.constant 0 : index
    %74 = arith.index_cast %c1_i32 : i32 to index
    %c0_21 = arith.constant 0 : index
    %75 = vector.load %arg5[%c0_20, %74, %c0_21] : memref<8x8x128xf32, #tpu.memory_space<vmem>>, vector<8x1x128xf32>
    %76 = vector.shape_cast %75 : vector<8x1x128xf32> to vector<8x128xf32>
    %77 = vector.shape_cast %73 : vector<8x128xf32> to vector<8x1x128xf32>
    tpu.vector_store %arg5[%c0_20, %74, %c0_21], %77 {strides = array<i32>} : memref<8x8x128xf32, #tpu.memory_space<vmem>>, vector<8x1x128xf32>,
    %c2_i32 = arith.constant 2 : i32
    %78 = arith.index_cast %c2_i32 : i32 to index
    %c0_22 = arith.constant 0 : index
    %c0_23 = arith.constant 0 : index
    %79 = vector.load %arg2[%78, %c0_22, %c0_23] : memref<8x8x384xf32, #tpu.memory_space<vmem>>, vector<1x8x384xf32>
    %80 = vector.shape_cast %79 : vector<1x8x384xf32> to vector<8x384xf32>
    %cst_24 = arith.constant dense<0.000000e+00> : vector<8x384xf32>
    %81 = tpu.matmul %73, %3, %cst_24 {dimension_numbers = #tpu.dot_dimension_numbers<[1], [0], [0], [1], [0, 0, 1, 1], [], []>} : vector<8x128xf32>, vector<128x384xf32>, vector<8x384xf32> -> vector<8x384xf32>
    %82 = vector.extract_strided_slice %80 {offsets = [0, 0], sizes = [8, 128], strides = [1, 1]} : vector<8x384xf32> to vector<8x128xf32>
    %83 = vector.extract_strided_slice %81 {offsets = [0, 0], sizes = [8, 128], strides = [1, 1]} : vector<8x384xf32> to vector<8x128xf32>
    %84 = arith.addf %82, %83 : vector<8x128xf32>
    %85 = arith.negf %84 : vector<8x128xf32>
    %86 = math.exp %85 : vector<8x128xf32>
    %cst_25 = arith.constant 1.000000e+00 : f32
    %87 = vector.broadcast %cst_25 : f32 to vector<8x128xf32>
    %88 = arith.addf %87, %86 : vector<8x128xf32>
    %89 = arith.divf %87, %88 : vector<8x128xf32>
    %90 = vector.extract_strided_slice %80 {offsets = [0, 128], sizes = [8, 128], strides = [1, 1]} : vector<8x384xf32> to vector<8x128xf32>
    %91 = vector.extract_strided_slice %81 {offsets = [0, 128], sizes = [8, 128], strides = [1, 1]} : vector<8x384xf32> to vector<8x128xf32>
    %92 = arith.addf %90, %91 : vector<8x128xf32>
    %93 = arith.negf %92 : vector<8x128xf32>
    %94 = math.exp %93 : vector<8x128xf32>
    %cst_26 = arith.constant 1.000000e+00 : f32
    %95 = vector.broadcast %cst_26 : f32 to vector<8x128xf32>
    %96 = arith.addf %95, %94 : vector<8x128xf32>
    %97 = arith.divf %95, %96 : vector<8x128xf32>
    %98 = vector.extract_strided_slice %80 {offsets = [0, 256], sizes = [8, 128], strides = [1, 1]} : vector<8x384xf32> to vector<8x128xf32>
    %99 = vector.extract_strided_slice %81 {offsets = [0, 256], sizes = [8, 128], strides = [1, 1]} : vector<8x384xf32> to vector<8x128xf32>
    %100 = arith.addf %99, %6 : vector<8x128xf32>
    %101 = arith.mulf %89, %100 : vector<8x128xf32>
    %102 = arith.addf %98, %101 : vector<8x128xf32>
    %103 = math.tanh %102 : vector<8x128xf32>
    %cst_27 = arith.constant 1.000000e+00 : f32
    %104 = vector.broadcast %cst_27 : f32 to vector<8x128xf32>
    %105 = arith.subf %104, %97 : vector<8x128xf32>
    %106 = arith.mulf %105, %103 : vector<8x128xf32>
    %107 = arith.mulf %97, %73 : vector<8x128xf32>
    %108 = arith.addf %106, %107 : vector<8x128xf32>
    %c0_28 = arith.constant 0 : index
    %109 = arith.index_cast %c2_i32 : i32 to index
    %c0_29 = arith.constant 0 : index
    %110 = vector.load %arg5[%c0_28, %109, %c0_29] : memref<8x8x128xf32, #tpu.memory_space<vmem>>, vector<8x1x128xf32>
    %111 = vector.shape_cast %110 : vector<8x1x128xf32> to vector<8x128xf32>
    %112 = vector.shape_cast %108 : vector<8x128xf32> to vector<8x1x128xf32>
    tpu.vector_store %arg5[%c0_28, %109, %c0_29], %112 {strides = array<i32>} : memref<8x8x128xf32, #tpu.memory_space<vmem>>, vector<8x1x128xf32>,
    %c3_i32 = arith.constant 3 : i32
    %113 = arith.index_cast %c3_i32 : i32 to index
    %c0_30 = arith.constant 0 : index
    %c0_31 = arith.constant 0 : index
    %114 = vector.load %arg2[%113, %c0_30, %c0_31] : memref<8x8x384xf32, #tpu.memory_space<vmem>>, vector<1x8x384xf32>
    %115 = vector.shape_cast %114 : vector<1x8x384xf32> to vector<8x384xf32>
    %cst_32 = arith.constant dense<0.000000e+00> : vector<8x384xf32>
    %116 = tpu.matmul %108, %3, %cst_32 {dimension_numbers = #tpu.dot_dimension_numbers<[1], [0], [0], [1], [0, 0, 1, 1], [], []>} : vector<8x128xf32>, vector<128x384xf32>, vector<8x384xf32> -> vector<8x384xf32>
    %117 = vector.extract_strided_slice %115 {offsets = [0, 0], sizes = [8, 128], strides = [1, 1]} : vector<8x384xf32> to vector<8x128xf32>
    %118 = vector.extract_strided_slice %116 {offsets = [0, 0], sizes = [8, 128], strides = [1, 1]} : vector<8x384xf32> to vector<8x128xf32>
    %119 = arith.addf %117, %118 : vector<8x128xf32>
    %120 = arith.negf %119 : vector<8x128xf32>
    %121 = math.exp %120 : vector<8x128xf32>
    %cst_33 = arith.constant 1.000000e+00 : f32
    %122 = vector.broadcast %cst_33 : f32 to vector<8x128xf32>
    %123 = arith.addf %122, %121 : vector<8x128xf32>
    %124 = arith.divf %122, %123 : vector<8x128xf32>
    %125 = vector.extract_strided_slice %115 {offsets = [0, 128], sizes = [8, 128], strides = [1, 1]} : vector<8x384xf32> to vector<8x128xf32>
    %126 = vector.extract_strided_slice %116 {offsets = [0, 128], sizes = [8, 128], strides = [1, 1]} : vector<8x384xf32> to vector<8x128xf32>
    %127 = arith.addf %125, %126 : vector<8x128xf32>
    %128 = arith.negf %127 : vector<8x128xf32>
    %129 = math.exp %128 : vector<8x128xf32>
    %cst_34 = arith.constant 1.000000e+00 : f32
    %130 = vector.broadcast %cst_34 : f32 to vector<8x128xf32>
    %131 = arith.addf %130, %129 : vector<8x128xf32>
    %132 = arith.divf %130, %131 : vector<8x128xf32>
    %133 = vector.extract_strided_slice %115 {offsets = [0, 256], sizes = [8, 128], strides = [1, 1]} : vector<8x384xf32> to vector<8x128xf32>
    %134 = vector.extract_strided_slice %116 {offsets = [0, 256], sizes = [8, 128], strides = [1, 1]} : vector<8x384xf32> to vector<8x128xf32>
    %135 = arith.addf %134, %6 : vector<8x128xf32>
    %136 = arith.mulf %124, %135 : vector<8x128xf32>
    %137 = arith.addf %133, %136 : vector<8x128xf32>
    %138 = math.tanh %137 : vector<8x128xf32>
    %cst_35 = arith.constant 1.000000e+00 : f32
    %139 = vector.broadcast %cst_35 : f32 to vector<8x128xf32>
    %140 = arith.subf %139, %132 : vector<8x128xf32>
    %141 = arith.mulf %140, %138 : vector<8x128xf32>
    %142 = arith.mulf %132, %108 : vector<8x128xf32>
    %143 = arith.addf %141, %142 : vector<8x128xf32>
    %c0_36 = arith.constant 0 : index
    %144 = arith.index_cast %c3_i32 : i32 to index
    %c0_37 = arith.constant 0 : index
    %145 = vector.load %arg5[%c0_36, %144, %c0_37] : memref<8x8x128xf32, #tpu.memory_space<vmem>>, vector<8x1x128xf32>
    %146 = vector.shape_cast %145 : vector<8x1x128xf32> to vector<8x128xf32>
    %147 = vector.shape_cast %143 : vector<8x128xf32> to vector<8x1x128xf32>
    tpu.vector_store %arg5[%c0_36, %144, %c0_37], %147 {strides = array<i32>} : memref<8x8x128xf32, #tpu.memory_space<vmem>>, vector<8x1x128xf32>,
    %c4_i32 = arith.constant 4 : i32
    %148 = arith.index_cast %c4_i32 : i32 to index
    %c0_38 = arith.constant 0 : index
    %c0_39 = arith.constant 0 : index
    %149 = vector.load %arg2[%148, %c0_38, %c0_39] : memref<8x8x384xf32, #tpu.memory_space<vmem>>, vector<1x8x384xf32>
    %150 = vector.shape_cast %149 : vector<1x8x384xf32> to vector<8x384xf32>
    %cst_40 = arith.constant dense<0.000000e+00> : vector<8x384xf32>
    %151 = tpu.matmul %143, %3, %cst_40 {dimension_numbers = #tpu.dot_dimension_numbers<[1], [0], [0], [1], [0, 0, 1, 1], [], []>} : vector<8x128xf32>, vector<128x384xf32>, vector<8x384xf32> -> vector<8x384xf32>
    %152 = vector.extract_strided_slice %150 {offsets = [0, 0], sizes = [8, 128], strides = [1, 1]} : vector<8x384xf32> to vector<8x128xf32>
    %153 = vector.extract_strided_slice %151 {offsets = [0, 0], sizes = [8, 128], strides = [1, 1]} : vector<8x384xf32> to vector<8x128xf32>
    %154 = arith.addf %152, %153 : vector<8x128xf32>
    %155 = arith.negf %154 : vector<8x128xf32>
    %156 = math.exp %155 : vector<8x128xf32>
    %cst_41 = arith.constant 1.000000e+00 : f32
    %157 = vector.broadcast %cst_41 : f32 to vector<8x128xf32>
    %158 = arith.addf %157, %156 : vector<8x128xf32>
    %159 = arith.divf %157, %158 : vector<8x128xf32>
    %160 = vector.extract_strided_slice %150 {offsets = [0, 128], sizes = [8, 128], strides = [1, 1]} : vector<8x384xf32> to vector<8x128xf32>
    %161 = vector.extract_strided_slice %151 {offsets = [0, 128], sizes = [8, 128], strides = [1, 1]} : vector<8x384xf32> to vector<8x128xf32>
    %162 = arith.addf %160, %161 : vector<8x128xf32>
    %163 = arith.negf %162 : vector<8x128xf32>
    %164 = math.exp %163 : vector<8x128xf32>
    %cst_42 = arith.constant 1.000000e+00 : f32
    %165 = vector.broadcast %cst_42 : f32 to vector<8x128xf32>
    %166 = arith.addf %165, %164 : vector<8x128xf32>
    %167 = arith.divf %165, %166 : vector<8x128xf32>
    %168 = vector.extract_strided_slice %150 {offsets = [0, 256], sizes = [8, 128], strides = [1, 1]} : vector<8x384xf32> to vector<8x128xf32>
    %169 = vector.extract_strided_slice %151 {offsets = [0, 256], sizes = [8, 128], strides = [1, 1]} : vector<8x384xf32> to vector<8x128xf32>
    %170 = arith.addf %169, %6 : vector<8x128xf32>
    %171 = arith.mulf %159, %170 : vector<8x128xf32>
    %172 = arith.addf %168, %171 : vector<8x128xf32>
    %173 = math.tanh %172 : vector<8x128xf32>
    %cst_43 = arith.constant 1.000000e+00 : f32
    %174 = vector.broadcast %cst_43 : f32 to vector<8x128xf32>
    %175 = arith.subf %174, %167 : vector<8x128xf32>
    %176 = arith.mulf %175, %173 : vector<8x128xf32>
    %177 = arith.mulf %167, %143 : vector<8x128xf32>
    %178 = arith.addf %176, %177 : vector<8x128xf32>
    %c0_44 = arith.constant 0 : index
    %179 = arith.index_cast %c4_i32 : i32 to index
    %c0_45 = arith.constant 0 : index
    %180 = vector.load %arg5[%c0_44, %179, %c0_45] : memref<8x8x128xf32, #tpu.memory_space<vmem>>, vector<8x1x128xf32>
    %181 = vector.shape_cast %180 : vector<8x1x128xf32> to vector<8x128xf32>
    %182 = vector.shape_cast %178 : vector<8x128xf32> to vector<8x1x128xf32>
    tpu.vector_store %arg5[%c0_44, %179, %c0_45], %182 {strides = array<i32>} : memref<8x8x128xf32, #tpu.memory_space<vmem>>, vector<8x1x128xf32>,
    %c5_i32 = arith.constant 5 : i32
    %183 = arith.index_cast %c5_i32 : i32 to index
    %c0_46 = arith.constant 0 : index
    %c0_47 = arith.constant 0 : index
    %184 = vector.load %arg2[%183, %c0_46, %c0_47] : memref<8x8x384xf32, #tpu.memory_space<vmem>>, vector<1x8x384xf32>
    %185 = vector.shape_cast %184 : vector<1x8x384xf32> to vector<8x384xf32>
    %cst_48 = arith.constant dense<0.000000e+00> : vector<8x384xf32>
    %186 = tpu.matmul %178, %3, %cst_48 {dimension_numbers = #tpu.dot_dimension_numbers<[1], [0], [0], [1], [0, 0, 1, 1], [], []>} : vector<8x128xf32>, vector<128x384xf32>, vector<8x384xf32> -> vector<8x384xf32>
    %187 = vector.extract_strided_slice %185 {offsets = [0, 0], sizes = [8, 128], strides = [1, 1]} : vector<8x384xf32> to vector<8x128xf32>
    %188 = vector.extract_strided_slice %186 {offsets = [0, 0], sizes = [8, 128], strides = [1, 1]} : vector<8x384xf32> to vector<8x128xf32>
    %189 = arith.addf %187, %188 : vector<8x128xf32>
    %190 = arith.negf %189 : vector<8x128xf32>
    %191 = math.exp %190 : vector<8x128xf32>
    %cst_49 = arith.constant 1.000000e+00 : f32
    %192 = vector.broadcast %cst_49 : f32 to vector<8x128xf32>
    %193 = arith.addf %192, %191 : vector<8x128xf32>
    %194 = arith.divf %192, %193 : vector<8x128xf32>
    %195 = vector.extract_strided_slice %185 {offsets = [0, 128], sizes = [8, 128], strides = [1, 1]} : vector<8x384xf32> to vector<8x128xf32>
    %196 = vector.extract_strided_slice %186 {offsets = [0, 128], sizes = [8, 128], strides = [1, 1]} : vector<8x384xf32> to vector<8x128xf32>
    %197 = arith.addf %195, %196 : vector<8x128xf32>
    %198 = arith.negf %197 : vector<8x128xf32>
    %199 = math.exp %198 : vector<8x128xf32>
    %cst_50 = arith.constant 1.000000e+00 : f32
    %200 = vector.broadcast %cst_50 : f32 to vector<8x128xf32>
    %201 = arith.addf %200, %199 : vector<8x128xf32>
    %202 = arith.divf %200, %201 : vector<8x128xf32>
    %203 = vector.extract_strided_slice %185 {offsets = [0, 256], sizes = [8, 128], strides = [1, 1]} : vector<8x384xf32> to vector<8x128xf32>
    %204 = vector.extract_strided_slice %186 {offsets = [0, 256], sizes = [8, 128], strides = [1, 1]} : vector<8x384xf32> to vector<8x128xf32>
    %205 = arith.addf %204, %6 : vector<8x128xf32>
    %206 = arith.mulf %194, %205 : vector<8x128xf32>
    %207 = arith.addf %203, %206 : vector<8x128xf32>
    %208 = math.tanh %207 : vector<8x128xf32>
    %cst_51 = arith.constant 1.000000e+00 : f32
    %209 = vector.broadcast %cst_51 : f32 to vector<8x128xf32>
    %210 = arith.subf %209, %202 : vector<8x128xf32>
    %211 = arith.mulf %210, %208 : vector<8x128xf32>
    %212 = arith.mulf %202, %178 : vector<8x128xf32>
    %213 = arith.addf %211, %212 : vector<8x128xf32>
    %c0_52 = arith.constant 0 : index
    %214 = arith.index_cast %c5_i32 : i32 to index
    %c0_53 = arith.constant 0 : index
    %215 = vector.load %arg5[%c0_52, %214, %c0_53] : memref<8x8x128xf32, #tpu.memory_space<vmem>>, vector<8x1x128xf32>
    %216 = vector.shape_cast %215 : vector<8x1x128xf32> to vector<8x128xf32>
    %217 = vector.shape_cast %213 : vector<8x128xf32> to vector<8x1x128xf32>
    tpu.vector_store %arg5[%c0_52, %214, %c0_53], %217 {strides = array<i32>} : memref<8x8x128xf32, #tpu.memory_space<vmem>>, vector<8x1x128xf32>,
    %c6_i32 = arith.constant 6 : i32
    %218 = arith.index_cast %c6_i32 : i32 to index
    %c0_54 = arith.constant 0 : index
    %c0_55 = arith.constant 0 : index
    %219 = vector.load %arg2[%218, %c0_54, %c0_55] : memref<8x8x384xf32, #tpu.memory_space<vmem>>, vector<1x8x384xf32>
    %220 = vector.shape_cast %219 : vector<1x8x384xf32> to vector<8x384xf32>
    %cst_56 = arith.constant dense<0.000000e+00> : vector<8x384xf32>
    %221 = tpu.matmul %213, %3, %cst_56 {dimension_numbers = #tpu.dot_dimension_numbers<[1], [0], [0], [1], [0, 0, 1, 1], [], []>} : vector<8x128xf32>, vector<128x384xf32>, vector<8x384xf32> -> vector<8x384xf32>
    %222 = vector.extract_strided_slice %220 {offsets = [0, 0], sizes = [8, 128], strides = [1, 1]} : vector<8x384xf32> to vector<8x128xf32>
    %223 = vector.extract_strided_slice %221 {offsets = [0, 0], sizes = [8, 128], strides = [1, 1]} : vector<8x384xf32> to vector<8x128xf32>
    %224 = arith.addf %222, %223 : vector<8x128xf32>
    %225 = arith.negf %224 : vector<8x128xf32>
    %226 = math.exp %225 : vector<8x128xf32>
    %cst_57 = arith.constant 1.000000e+00 : f32
    %227 = vector.broadcast %cst_57 : f32 to vector<8x128xf32>
    %228 = arith.addf %227, %226 : vector<8x128xf32>
    %229 = arith.divf %227, %228 : vector<8x128xf32>
    %230 = vector.extract_strided_slice %220 {offsets = [0, 128], sizes = [8, 128], strides = [1, 1]} : vector<8x384xf32> to vector<8x128xf32>
    %231 = vector.extract_strided_slice %221 {offsets = [0, 128], sizes = [8, 128], strides = [1, 1]} : vector<8x384xf32> to vector<8x128xf32>
    %232 = arith.addf %230, %231 : vector<8x128xf32>
    %233 = arith.negf %232 : vector<8x128xf32>
    %234 = math.exp %233 : vector<8x128xf32>
    %cst_58 = arith.constant 1.000000e+00 : f32
    %235 = vector.broadcast %cst_58 : f32 to vector<8x128xf32>
    %236 = arith.addf %235, %234 : vector<8x128xf32>
    %237 = arith.divf %235, %236 : vector<8x128xf32>
    %238 = vector.extract_strided_slice %220 {offsets = [0, 256], sizes = [8, 128], strides = [1, 1]} : vector<8x384xf32> to vector<8x128xf32>
    %239 = vector.extract_strided_slice %221 {offsets = [0, 256], sizes = [8, 128], strides = [1, 1]} : vector<8x384xf32> to vector<8x128xf32>
    %240 = arith.addf %239, %6 : vector<8x128xf32>
    %241 = arith.mulf %229, %240 : vector<8x128xf32>
    %242 = arith.addf %238, %241 : vector<8x128xf32>
    %243 = math.tanh %242 : vector<8x128xf32>
    %cst_59 = arith.constant 1.000000e+00 : f32
    %244 = vector.broadcast %cst_59 : f32 to vector<8x128xf32>
    %245 = arith.subf %244, %237 : vector<8x128xf32>
    %246 = arith.mulf %245, %243 : vector<8x128xf32>
    %247 = arith.mulf %237, %213 : vector<8x128xf32>
    %248 = arith.addf %246, %247 : vector<8x128xf32>
    %c0_60 = arith.constant 0 : index
    %249 = arith.index_cast %c6_i32 : i32 to index
    %c0_61 = arith.constant 0 : index
    %250 = vector.load %arg5[%c0_60, %249, %c0_61] : memref<8x8x128xf32, #tpu.memory_space<vmem>>, vector<8x1x128xf32>
    %251 = vector.shape_cast %250 : vector<8x1x128xf32> to vector<8x128xf32>
    %252 = vector.shape_cast %248 : vector<8x128xf32> to vector<8x1x128xf32>
    tpu.vector_store %arg5[%c0_60, %249, %c0_61], %252 {strides = array<i32>} : memref<8x8x128xf32, #tpu.memory_space<vmem>>, vector<8x1x128xf32>,
    %c7_i32 = arith.constant 7 : i32
    %253 = arith.index_cast %c7_i32 : i32 to index
    %c0_62 = arith.constant 0 : index
    %c0_63 = arith.constant 0 : index
    %254 = vector.load %arg2[%253, %c0_62, %c0_63] : memref<8x8x384xf32, #tpu.memory_space<vmem>>, vector<1x8x384xf32>
    %255 = vector.shape_cast %254 : vector<1x8x384xf32> to vector<8x384xf32>
    %cst_64 = arith.constant dense<0.000000e+00> : vector<8x384xf32>
    %256 = tpu.matmul %248, %3, %cst_64 {dimension_numbers = #tpu.dot_dimension_numbers<[1], [0], [0], [1], [0, 0, 1, 1], [], []>} : vector<8x128xf32>, vector<128x384xf32>, vector<8x384xf32> -> vector<8x384xf32>
    %257 = vector.extract_strided_slice %255 {offsets = [0, 0], sizes = [8, 128], strides = [1, 1]} : vector<8x384xf32> to vector<8x128xf32>
    %258 = vector.extract_strided_slice %256 {offsets = [0, 0], sizes = [8, 128], strides = [1, 1]} : vector<8x384xf32> to vector<8x128xf32>
    %259 = arith.addf %257, %258 : vector<8x128xf32>
    %260 = arith.negf %259 : vector<8x128xf32>
    %261 = math.exp %260 : vector<8x128xf32>
    %cst_65 = arith.constant 1.000000e+00 : f32
    %262 = vector.broadcast %cst_65 : f32 to vector<8x128xf32>
    %263 = arith.addf %262, %261 : vector<8x128xf32>
    %264 = arith.divf %262, %263 : vector<8x128xf32>
    %265 = vector.extract_strided_slice %255 {offsets = [0, 128], sizes = [8, 128], strides = [1, 1]} : vector<8x384xf32> to vector<8x128xf32>
    %266 = vector.extract_strided_slice %256 {offsets = [0, 128], sizes = [8, 128], strides = [1, 1]} : vector<8x384xf32> to vector<8x128xf32>
    %267 = arith.addf %265, %266 : vector<8x128xf32>
    %268 = arith.negf %267 : vector<8x128xf32>
    %269 = math.exp %268 : vector<8x128xf32>
    %cst_66 = arith.constant 1.000000e+00 : f32
    %270 = vector.broadcast %cst_66 : f32 to vector<8x128xf32>
    %271 = arith.addf %270, %269 : vector<8x128xf32>
    %272 = arith.divf %270, %271 : vector<8x128xf32>
    %273 = vector.extract_strided_slice %255 {offsets = [0, 256], sizes = [8, 128], strides = [1, 1]} : vector<8x384xf32> to vector<8x128xf32>
    %274 = vector.extract_strided_slice %256 {offsets = [0, 256], sizes = [8, 128], strides = [1, 1]} : vector<8x384xf32> to vector<8x128xf32>
    %275 = arith.addf %274, %6 : vector<8x128xf32>
    %276 = arith.mulf %264, %275 : vector<8x128xf32>
    %277 = arith.addf %273, %276 : vector<8x128xf32>
    %278 = math.tanh %277 : vector<8x128xf32>
    %cst_67 = arith.constant 1.000000e+00 : f32
    %279 = vector.broadcast %cst_67 : f32 to vector<8x128xf32>
    %280 = arith.subf %279, %272 : vector<8x128xf32>
    %281 = arith.mulf %280, %278 : vector<8x128xf32>
    %282 = arith.mulf %272, %248 : vector<8x128xf32>
    %283 = arith.addf %281, %282 : vector<8x128xf32>
    %c0_68 = arith.constant 0 : index
    %284 = arith.index_cast %c7_i32 : i32 to index
    %c0_69 = arith.constant 0 : index
    %285 = vector.load %arg5[%c0_68, %284, %c0_69] : memref<8x8x128xf32, #tpu.memory_space<vmem>>, vector<8x1x128xf32>
    %286 = vector.shape_cast %285 : vector<8x1x128xf32> to vector<8x128xf32>
    %287 = vector.shape_cast %283 : vector<8x128xf32> to vector<8x1x128xf32>
    tpu.vector_store %arg5[%c0_68, %284, %c0_69], %287 {strides = array<i32>} : memref<8x8x128xf32, #tpu.memory_space<vmem>>, vector<8x1x128xf32>,
    %c8_i32 = arith.constant 8 : i32
    %c0_70 = arith.constant 0 : index
    %c0_71 = arith.constant 0 : index
    %288 = vector.load %arg7[%c0_70, %c0_71] : memref<8x128xf32, #tpu.memory_space<vmem>>, vector<8x128xf32>
    tpu.vector_store %arg7[%c0_70, %c0_71], %283 {strides = array<i32>} : memref<8x128xf32, #tpu.memory_space<vmem>>, vector<8x128xf32>,
    %c0_i32_72 = arith.constant 0 : i32
    %289 = arith.cmpi eq, %arg1, %c0_i32_72 : i32
    %290 = arith.extui %289 : i1 to i32
    %c0_i32_73 = arith.constant 0 : i32
    %291 = arith.cmpi ne, %290, %c0_i32_73 : i32
    scf.if %291 {
      %c0_74 = arith.constant 0 : index
      %c0_75 = arith.constant 0 : index
      %292 = vector.load %arg7[%c0_74, %c0_75] : memref<8x128xf32, #tpu.memory_space<vmem>>, vector<8x128xf32>
      %c0_76 = arith.constant 0 : index
      %c0_77 = arith.constant 0 : index
      %293 = vector.load %arg6[%c0_76, %c0_77] : memref<8x128xf32, #tpu.memory_space<vmem>>, vector<8x128xf32>
      tpu.vector_store %arg6[%c0_76, %c0_77], %292 {strides = array<i32>} : memref<8x128xf32, #tpu.memory_space<vmem>>, vector<8x128xf32>,
    } else {
    }
    return
  }
  func.func @transform_0(%arg0: i32, %arg1: i32) -> (i32, i32, i32) {
    %c0_i32 = arith.constant 0 : i32
    %c0_i32_0 = arith.constant 0 : i32
    return %arg1, %arg0, %c0_i32 : i32, i32, i32
  }
  func.func @transform_1(%arg0: i32, %arg1: i32) -> (i32, i32) {
    %c0_i32 = arith.constant 0 : i32
    %c0_i32_0 = arith.constant 0 : i32
    %c0_i32_1 = arith.constant 0 : i32
    return %c0_i32, %c0_i32_0 : i32, i32
  }
  func.func @transform_2(%arg0: i32, %arg1: i32) -> (i32, i32) {
    %c0_i32 = arith.constant 0 : i32
    %c0_i32_0 = arith.constant 0 : i32
    %c0_i32_1 = arith.constant 0 : i32
    return %c0_i32, %c0_i32_0 : i32, i32
  }
  func.func @transform_3(%arg0: i32, %arg1: i32) -> (i32, i32, i32) {
    %c0_i32 = arith.constant 0 : i32
    %c0_i32_0 = arith.constant 0 : i32
    return %arg0, %arg1, %c0_i32 : i32, i32, i32
  }
  func.func @transform_4(%arg0: i32, %arg1: i32) -> (i32, i32) {
    %c0_i32 = arith.constant 0 : i32
    %c0_i32_0 = arith.constant 0 : i32
    return %arg0, %c0_i32 : i32, i32
  }
}

</mosaic_0001>

<bundles_post_ra>
// kernel: tpu_custom_call.1
= control target key start
LH: loop header
LB: loop body
LE: loop exit
PB: predicated region body
PF: predicated region fallthrough
CT: control target
= control target key end

     0   :  { %10 = vsyncpa [#allocation4], 0  ;;  %s3595_s0 = inlined_call_operand.hbm [shape: f32[8,8,384], index: 0, kind: input, shape index: {}]   ;;  %s3596_s1 = inlined_call_operand.hbm [shape: f32[128,384], index: 1, kind: input, shape index: {}]   ;;  %s3597_s2 = inlined_call_operand.vmem [shape: f32[1,128], index: 2, kind: input, shape index: {}]   ;;  %s3598_s3 = inlined_call_operand.hbm [shape: f32[8,8,128], index: 3, kind: output, shape index: {0}]   ;;  %s3599_s4 = inlined_call_operand.hbm [shape: f32[8,128], index: 4, kind: output, shape index: {1}]  }
   0x1   :  { %11 = vsyncpa [#allocation7], 0 }
   0x2   :  { %12 = vsyncpa [#allocation5], 0 }
   0x3   :  { %13 = vsyncpa [#allocation10], 0  ;;  %s2701_s15 = smov [#allocation3]  }
   0x4   :  { %s19_s16 = sshll.u32 %s2701_s15, 4  ;;  %s20_s16 = int_to_ptr.vmem [resolvable:$true] %s19_s16 }
   0x5   :  { %s2621_s17 = scalar_lea.vmem %s20_s16, 3072  ;;  %p2626_p1 = scmp.lt.s32.totalorder %s20_s16, %s20_s16 }
   0x6   :  { %p2622_p0 = scmp.ne.s32.totalorder %s20_s16, %s2621_s17  ;;  %p2627_p2 = scmp.lt.s32.totalorder %s2621_s17, %s2621_s17 }
   0x8   :  { %p2628_p3 = por %p2627_p2, %p2626_p1 }
   0xa   :  { %p2629_p4 = pnand %p2628_p3, %p2622_p0 }
   0xc   :  { %2632 = shalt.err (!%p2629_p4)
}
   0xd   :  { %s2702_s18 = smov 384   ;;  %s2703_s19 = smov 24  }
   0xe   :  { %25 = dma.hbm_to_vmem [thread:$0]  %s3595_s0, 3072, %s20_s16, [#allocation4], %s2702_s18, %s2702_s18, %s2703_s19  }
   0xf   :  { %s2704_s22 = smov [#allocation6]  }
  0x10   :  { %s31_s23 = sshll.u32 %s2704_s22, 4  ;;  %s32_s23 = int_to_ptr.vmem [resolvable:$true] %s31_s23 }
  0x11   :  { %s2641_s24 = scalar_lea.vmem %s32_s23, 6144  ;;  %p2646_p6 = scmp.lt.s32.totalorder %s32_s23, %s32_s23 }
  0x12   :  { %p2642_p5 = scmp.ne.s32.totalorder %s32_s23, %s2641_s24  ;;  %p2647_p7 = scmp.lt.s32.totalorder %s2641_s24, %s2641_s24 }
  0x14   :  { %p2648_p8 = por %p2647_p7, %p2646_p6 }
  0x16   :  { %p2649_p9 = pnand %p2648_p8, %p2642_p5 }
  0x18   :  { %2652 = shalt.err (!%p2649_p9)
}
  0x19   :  { %37 = dma.hbm_to_vmem [thread:$0]  %s3596_s1, 6144, %s32_s23, [#allocation7], %s2702_s18, %s2702_s18, %s2703_s19  }
  0x1a   :  { %2693 = dma.done.wait [#allocation4], 3072  }
  0x1b   :  { %2694 = vsyncadd [#allocation4], 4294964224 }
  0x1c   :  { %2695 = dma.done.wait [#allocation7], 6144  }
  0x1d   :  { %2696 = vsyncadd [#allocation7], 4294961152  ;;  %v3600_v0 = vmov 0.0   ;;  %vm2706_vm0 = vmmov 0   ;;  %v2747_v1 = vld [vmem:[#allocation6 + $0x170] sm:$0xff]  ;;  %v2749_v2 = vld [vmem:[#allocation6 + $0x168] sm:$0xff] }
  0x1e   :  { %2193 = vmatprep.subr.mxu1 %v3600_v0  ;;  %174 = vmatprep.mubr.f32.mxu0 %v3600_v0  ;;  %3625 = vst [vmem:[#allocation15_spill] sm:$0xff] %v2747_v1  ;;  %v2751_v3 = vld [vmem:[#allocation6 + $0x158] sm:$0xff]  ;;  %v2754_v4 = vld [vmem:[#allocation6 + $0x150] sm:$0xff]  ;;  %v2757_v5 = vld [vmem:[#allocation6 + $0x140] sm:$0xff] }
  0x1f   :  { %2225 = vmatprep.mubr.msk.f32.mxu1 %vm2706_vm0, %v3600_v0  ;;  %110 = vmatprep.subr.mxu0 %v2747_v1  ;;  %v2760_v6 = vld [vmem:[#allocation6 + $0x138] sm:$0xff]  ;;  %v2763_v7 = vld [vmem:[#allocation6 + $0x128] sm:$0xff]  ;;  %v2766_v8 = vld [vmem:[#allocation6 + $0x120] sm:$0xff] }
  0x20   :  { %111 = vmatpush1.msra.mxu0 %v2749_v2  ;;  %v2769_v9 = vld [vmem:[#allocation6 + $0x110] sm:$0xff]  ;;  %v2772_v10 = vld [vmem:[#allocation6 + $0x108] sm:$0xff]  ;;  %v2775_v11 = vld [vmem:[#allocation6 + $0xf8] sm:$0xff] }
  0x21   :  { %112 = vmatprep.subr.mxu0 %v2751_v3  ;;  %v2778_v12 = vld [vmem:[#allocation6 + $0xf0] sm:$0xff]  ;;  %v2781_v13 = vld [vmem:[#allocation6 + $0xe0] sm:$0xff]  ;;  %v2783_v14 = vld [vmem:[#allocation6 + $0x178] sm:$0xff] }
  0x22   :  { %113 = vmatpush1.msra.mxu0 %v2754_v4  ;;  %v2786_v15 = vld [vmem:[#allocation6 + $0xd8] sm:$0xff]  ;;  %2194 = vmatpush3.msra.mxu1 %v2783_v14  ;;  %v2789_v16 = vld [vmem:[#allocation6 + $0x160] sm:$0xff]  ;;  %v2792_v17 = vld [vmem:[#allocation6 + $0xc8] sm:$0xff] }
  0x23   :  { %114 = vmatprep.subr.mxu0 %v2757_v5  ;;  %2195 = vmatprep.subr.mxu1 %v3600_v0  ;;  %v2795_v18 = vld [vmem:[#allocation6 + $0x148] sm:$0xff]  ;;  %v2798_v19 = vld [vmem:[#allocation6 + $0xc0] sm:$0xff]  ;;  %v2802_v20 = vld [vmem:[#allocation6 + $0xb0] sm:$0xff] }
  0x24   :  { %115 = vmatpush1.msra.mxu0 %v2760_v6  ;;  %2196 = vmatpush3.msra.mxu1 %v2789_v16  ;;  %v2805_v21 = vld [vmem:[#allocation6 + $0x130] sm:$0xff]  ;;  %v2808_v22 = vld [vmem:[#allocation6 + $0xa8] sm:$0xff]  ;;  %v2812_v23 = vld [vmem:[#allocation6 + $0x98] sm:$0xff] }
  0x25   :  { %116 = vmatprep.subr.mxu0 %v2763_v7  ;;  %2197 = vmatprep.subr.mxu1 %v3600_v0  ;;  %v2815_v24 = vld [vmem:[#allocation6 + $0x118] sm:$0xff]  ;;  %v2818_v25 = vld [vmem:[#allocation6 + $0x90] sm:$0xff]  ;;  %v2822_v26 = vld [vmem:[#allocation6 + $0x80] sm:$0xff] }
  0x26   :  { %117 = vmatpush1.msra.mxu0 %v2766_v8  ;;  %2198 = vmatpush3.msra.mxu1 %v2795_v18  ;;  %v2825_v27 = vld [vmem:[#allocation6 + $0x100] sm:$0xff]  ;;  %v2828_v28 = vld [vmem:[#allocation6 + $0x78] sm:$0xff]  ;;  %v2832_v29 = vld [vmem:[#allocation6 + $0x68] sm:$0xff] }
  0x27   :  { %118 = vmatprep.subr.mxu0 %v2769_v9  ;;  %2199 = vmatprep.subr.mxu1 %v3600_v0  ;;  %v2835_v30 = vld [vmem:[#allocation6 + $0xe8] sm:$0xff]  ;;  %v2838_v31 = vld [vmem:[#allocation6 + $0x60] sm:$0xff]  ;;  %v2842_v32 = vld [vmem:[#allocation6 + $0x50] sm:$0xff] }
  0x28   :  { %119 = vmatpush1.msra.mxu0 %v2772_v10  ;;  %2200 = vmatpush3.msra.mxu1 %v2805_v21  ;;  %v2845_v33 = vld [vmem:[#allocation6 + $0xd0] sm:$0xff]  ;;  %v2848_v34 = vld [vmem:[#allocation6 + $0x48] sm:$0xff]  ;;  %v2852_v35 = vld [vmem:[#allocation6 + $0x38] sm:$0xff] }
  0x29   :  { %120 = vmatprep.subr.mxu0 %v2775_v11  ;;  %2201 = vmatprep.subr.mxu1 %v3600_v0  ;;  %v2855_v36 = vld [vmem:[#allocation6 + $0xb8] sm:$0xff]  ;;  %v2858_v37 = vld [vmem:[#allocation6 + $0x30] sm:$0xff]  ;;  %v2862_v38 = vld [vmem:[#allocation6 + $0x20] sm:$0xff] }
  0x2a   :  { %121 = vmatpush1.msra.mxu0 %v2778_v12  ;;  %2202 = vmatpush3.msra.mxu1 %v2815_v24  ;;  %v2865_v39 = vld [vmem:[#allocation6 + $0xa0] sm:$0xff]  ;;  %v2868_v40 = vld [vmem:[#allocation6 + $0x18] sm:$0xff]  ;;  %v2872_v41 = vld [vmem:[#allocation6 + $0x8] sm:$0xff] }
  0x2b   :  { %122 = vmatprep.subr.mxu0 %v2781_v13  ;;  %2203 = vmatprep.subr.mxu1 %v3600_v0  ;;  %3626 = vst [vmem:[#allocation16_spill] sm:$0xff] %v2868_v40  ;;  %3627 = vst [vmem:[#allocation17_spill] sm:$0xff] %v2872_v41  ;;  %v2875_v42 = vld [vmem:[#allocation6 + $0x88] sm:$0xff]  ;;  %v2878_v43 = vld [vmem:[#allocation6] sm:$0xff] }
  0x2c   :  { %123 = vmatpush1.msra.mxu0 %v2786_v15  ;;  %2204 = vmatpush3.msra.mxu1 %v2825_v27  ;;  %3628 = vst [vmem:[#allocation18_spill] sm:$0xff] %v2878_v43  ;;  %v2883_v44 = vld [vmem:[#allocation6 + $0x70] sm:$0xff]  ;;  %v2889_v45 = vld [vmem:[#allocation6 + $0x58] sm:$0xff]  ;;  %v2894_v46 = vld [vmem:[#allocation6 + $0x40] sm:$0xff] }
  0x2d   :  { %124 = vmatprep.subr.mxu0 %v2792_v17  ;;  %2205 = vmatprep.subr.mxu1 %v3600_v0  ;;  %v2900_v47 = vld [vmem:[#allocation6 + $0x28] sm:$0xff]  ;;  %v2906_v48 = vld [vmem:[#allocation6 + $0x10] sm:$0xff]  ;;  %v107_v49 = vld [vmem:[#allocation3] sm:$0xff] }
  0x2e   :  { %125 = vmatpush1.msra.mxu0 %v2798_v19  ;;  %2206 = vmatpush3.msra.mxu1 %v2835_v30  ;;  %3629 = vst [vmem:[#allocation19_spill] sm:$0xff] %v2900_v47  ;;  %3630 = vst [vmem:[#allocation20_spill] sm:$0xff] %v2906_v48  ;;  %v108_v53 = vld [vmem:[#allocation3 + $0x8] sm:$0xff]  ;;  %v2980_v62 = vld [vmem:[%s3597_s2] ss:$0 sm:$0xff] }
  0x2f   :  { %126 = vmatprep.subr.mxu0 %v2802_v20  ;;  %2207 = vmatprep.subr.mxu1 %v3600_v0 }
  0x30   :  { %127 = vmatpush1.msra.mxu0 %v2808_v22  ;;  %2208 = vmatpush3.msra.mxu1 %v2845_v33 }
  0x31   :  { %128 = vmatprep.subr.mxu0 %v2812_v23  ;;  %2209 = vmatprep.subr.mxu1 %v3600_v0 }
  0x32   :  { %129 = vmatpush1.msra.mxu0 %v2818_v25  ;;  %2210 = vmatpush3.msra.mxu1 %v2855_v36 }
  0x33   :  { %130 = vmatprep.subr.mxu0 %v2822_v26  ;;  %2211 = vmatprep.subr.mxu1 %v3600_v0 }
  0x34   :  { %131 = vmatpush1.msra.mxu0 %v2828_v28  ;;  %2212 = vmatpush3.msra.mxu1 %v2865_v39 }
  0x35   :  { %132 = vmatprep.subr.mxu0 %v2832_v29  ;;  %2213 = vmatprep.subr.mxu1 %v3600_v0 }
  0x36   :  { %133 = vmatpush1.msra.mxu0 %v2838_v31  ;;  %2214 = vmatpush3.msra.mxu1 %v2875_v42 }
  0x37   :  { %134 = vmatprep.subr.mxu0 %v2842_v32  ;;  %2215 = vmatprep.subr.mxu1 %v3600_v0 }
  0x38   :  { %135 = vmatpush1.msra.mxu0 %v2848_v34  ;;  %2216 = vmatpush3.msra.mxu1 %v2883_v44 }
  0x39   :  { %136 = vmatprep.subr.mxu0 %v2852_v35  ;;  %2217 = vmatprep.subr.mxu1 %v3600_v0 }
  0x3a   :  { %137 = vmatpush1.msra.mxu0 %v2858_v37  ;;  %2218 = vmatpush3.msra.mxu1 %v2889_v45 }
  0x3b   :  { %138 = vmatprep.subr.mxu0 %v2862_v38  ;;  %2219 = vmatprep.subr.mxu1 %v3600_v0 }
  0x3c   :  { %139 = vmatpush1.msra.mxu0 %v2868_v40  ;;  %2220 = vmatpush3.msra.mxu1 %v2894_v46 }
  0x3d   :  { %140 = vmatprep.subr.mxu0 %v2872_v41  ;;  %2221 = vmatprep.subr.mxu1 %v3600_v0 }
  0x3e   :  { %141 = vmatpush1.msra.mxu0 %v2878_v43  ;;  %2222 = vmatpush3.msra.mxu1 %v2900_v47 }
  0x3f   :  { %175 = vmatmul.mubr.f32.vlgmr.msra.gmra.mxu0 %v3600_v0  ;;  %343 = vmatprep.subr.mxu0 %v2747_v1 }
  0x40   :  { %344 = vmatpush1.msra.mxu0 %v2749_v2  ;;  %2223 = vmatprep.subr.mxu1 %v3600_v0 }
  0x41   :  { %345 = vmatprep.subr.mxu0 %v2751_v3  ;;  %2224 = vmatpush3.msra.mxu1 %v2906_v48 }
  0x42   :  { %346 = vmatpush1.msra.mxu0 %v2754_v4  ;;  %2226 = vmatmul.mubr.f32.vlgmr.msra.gmra.mxu1 %v3600_v0 }
  0x43   :  { %347 = vmatprep.subr.mxu0 %v2757_v5  ;;  %2228 = vmatprep.subr.mxu1 %v3600_v0 }
  0x44   :  { %348 = vmatpush1.msra.mxu0 %v2760_v6  ;;  %2229 = vmatpush3.msra.mxu1 %v2783_v14 }
  0x45   :  { %349 = vmatprep.subr.mxu0 %v2763_v7  ;;  %2230 = vmatprep.subr.mxu1 %v3600_v0 }
  0x46   :  { %350 = vmatpush1.msra.mxu0 %v2766_v8  ;;  %2231 = vmatpush3.msra.mxu1 %v2789_v16 }
  0x47   :  { %351 = vmatprep.subr.mxu0 %v2769_v9  ;;  %2232 = vmatprep.subr.mxu1 %v3600_v0 }
  0x48   :  { %352 = vmatpush1.msra.mxu0 %v2772_v10  ;;  %2233 = vmatpush3.msra.mxu1 %v2795_v18 }
  0x49   :  { %353 = vmatprep.subr.mxu0 %v2775_v11  ;;  %2234 = vmatprep.subr.mxu1 %v3600_v0 }
  0x4a   :  { %354 = vmatpush1.msra.mxu0 %v2778_v12  ;;  %2235 = vmatpush3.msra.mxu1 %v2805_v21 }
  0x4b   :  { %355 = vmatprep.subr.mxu0 %v2781_v13  ;;  %2236 = vmatprep.subr.mxu1 %v3600_v0 }
  0x4c   :  { %356 = vmatpush1.msra.mxu0 %v2786_v15  ;;  %2237 = vmatpush3.msra.mxu1 %v2815_v24 }
  0x4d   :  { %357 = vmatprep.subr.mxu0 %v2792_v17  ;;  %2238 = vmatprep.subr.mxu1 %v3600_v0 }
  0x4e   :  { %358 = vmatpush1.msra.mxu0 %v2798_v19  ;;  %2239 = vmatpush3.msra.mxu1 %v2825_v27 }
  0x4f   :  { %359 = vmatprep.subr.mxu0 %v2802_v20  ;;  %2240 = vmatprep.subr.mxu1 %v3600_v0 }
  0x50   :  { %360 = vmatpush1.msra.mxu0 %v2808_v22  ;;  %2241 = vmatpush3.msra.mxu1 %v2835_v30 }
  0x51   :  { %361 = vmatprep.subr.mxu0 %v2812_v23  ;;  %2242 = vmatprep.subr.mxu1 %v3600_v0 }
  0x52   :  { %362 = vmatpush1.msra.mxu0 %v2818_v25  ;;  %2243 = vmatpush3.msra.mxu1 %v2845_v33 }
  0x53   :  { %363 = vmatprep.subr.mxu0 %v2822_v26  ;;  %2244 = vmatprep.subr.mxu1 %v3600_v0 }
  0x54   :  { %364 = vmatpush1.msra.mxu0 %v2828_v28  ;;  %2245 = vmatpush3.msra.mxu1 %v2855_v36 }
  0x55   :  { %365 = vmatprep.subr.mxu0 %v2832_v29  ;;  %2246 = vmatprep.subr.mxu1 %v3600_v0 }
  0x56   :  { %366 = vmatpush1.msra.mxu0 %v2838_v31  ;;  %2247 = vmatpush3.msra.mxu1 %v2865_v39 }
  0x57   :  { %367 = vmatprep.subr.mxu0 %v2842_v32  ;;  %2248 = vmatprep.subr.mxu1 %v3600_v0 }
  0x58   :  { %368 = vmatpush1.msra.mxu0 %v2848_v34  ;;  %2249 = vmatpush3.msra.mxu1 %v2875_v42 }
  0x59   :  { %369 = vmatprep.subr.mxu0 %v2852_v35  ;;  %2250 = vmatprep.subr.mxu1 %v3600_v0 }
  0x5a   :  { %370 = vmatpush1.msra.mxu0 %v2858_v37  ;;  %2251 = vmatpush3.msra.mxu1 %v2883_v44 }
  0x5b   :  { %371 = vmatprep.subr.mxu0 %v2862_v38  ;;  %2252 = vmatprep.subr.mxu1 %v3600_v0 }
  0x5c   :  { %372 = vmatpush1.msra.mxu0 %v2868_v40  ;;  %2253 = vmatpush3.msra.mxu1 %v2889_v45 }
  0x5d   :  { %373 = vmatprep.subr.mxu0 %v2872_v41  ;;  %407 = vmatprep.mubr.f32.mxu0 %v3600_v0 }
  0x5e   :  { %374 = vmatpush1.msra.mxu0 %v2878_v43  ;;  %2254 = vmatprep.subr.mxu1 %v3600_v0 }
  0x5f   :  { %2260 = vmatprep.mubr.msk.f32.mxu1 %vm2706_vm0, %v3600_v0  ;;  %2255 = vmatpush3.msra.mxu1 %v2894_v46 }
  0x60   :  { %576 = vmatprep.subr.mxu0 %v2747_v1  ;;  %2256 = vmatprep.subr.mxu1 %v3600_v0 }
  0x61   :  { %2257 = vmatpush3.msra.mxu1 %v2900_v47 }
  0x62   :  { %2258 = vmatprep.subr.mxu1 %v3600_v0 }
  0x63   :  { %2259 = vmatpush3.msra.mxu1 %v2906_v48 }
  0x64   :  { %2263 = vmatprep.subr.mxu1 %v3600_v0 }
  0xff   :  { %v176_v50 = vpop.f32.mrf.mxu0 }
 0x100   :  { %v251_v51 = vadd.f32 %v176_v50, %v107_v49 }
 0x101   :  { %v178_v54 = vpop.f32.mrf.mxu0 }
 0x102   :  { %v2009_v52 = vmul.f32 -1.442695, %v251_v51  ;;  %v258_v55 = vadd.f32 %v178_v54, %v108_v53  ;;  %v247_v56 = vpop.f32.mrf.mxu1  ;;  %v109_v51 = vld [vmem:[#allocation3 + $0x10] sm:$0xff]  ;;  %v2707_v54 = vmov 1966171168  }
 0x103   :  { %v265_v49 = vadd.f32 %v2980_v62, %v247_v56 }
 0x104   :  { %2484 = vpow2.f32 %v2009_v52  ;;  %v2010_v57 = vmul.f32 -1.442695, %v258_v55  ;;  %v2227_v58 = vpop.f32.mrf.mxu1  ;;  %v276_v55 = vunpack.c.l.s4 %v2707_v54 }
 0x106   :  { %2486 = vpow2.f32 %v2010_v57  ;;  %v278_v57 = vlaneseq }
 0x111   :  { %v2485_v59 = vpop.eup %2484 }
 0x112   :  { %v255_v60 = vadd.f32 1.0, %v2485_v59  ;;  %v277_v59 = vunpack.c.0.s8 %v276_v55 }
 0x113   :  { %v2487_v61 = vpop.eup %2486 }
 0x114   :  { %2488 = vrcp.f32 %v255_v60  ;;  %v262_v63 = vadd.f32 1.0, %v2487_v61  ;;  %v279_v60 = vshrl.u32 %v278_v57, 7 }
 0x116   :  { %2490 = vrcp.f32 %v262_v63  ;;  %v2983_v41 = vsub.s32 %v277_v59, %v279_v60  ;;  %v3633_v59 = vld [vmem:[#allocation18_spill] sm:$0xff]  ;;  %v3634_v60 = vld [vmem:[#allocation20_spill] sm:$0xff] }
 0x121   :  { %v2489_v50 = vpop.eup %2488 }
 0x122   :  { %v266_v52 = vmul.f32 %v2489_v50, %v265_v49 }
 0x123   :  { %v2491_v58 = vpop.eup %2490 }
 0x124   :  { %v267_v53 = vadd.f32 %v266_v52, %v109_v51  ;;  %v269_v0 = vsub.f32 1.0, %v2491_v58  ;;  %v271_v43 = vmul.f32 0.0, %v2491_v58  ;;  %v3632_v58 = vld [vmem:[#allocation17_spill] sm:$0xff] }
 0x126   :  { %2492 = vtanh.f32 %v267_v53 }
 0x133   :  { %v2493_v1 = vpop.eup %2492 }
 0x134   :  { %v270_v48 = vmul.f32 %v2493_v1, %v269_v0 }
 0x136   :  { %v2985_v61 = vadd.f32 %v271_v43, %v270_v48  ;;  %v3631_v48 = vmov 0.0  }
 0x138   :  { %v274_v56 = vcombine.high %v2985_v61, %v2985_v61  ;;  %v281_v63 = vrot.slane %v2985_v61, %v2983_v41  ;;  %408 = vmatmul.mubr.f32.vlgmr.msra.gmra.mxu0 %v2985_v61  ;;  %2261 = vmatmul.mubr.f32.vlgmr.msra.gmra.mxu1 %v2985_v61 }
 0x139   :  { %577 = vmatpush1.msra.mxu0 %v2749_v2  ;;  %2264 = vmatpush3.msra.mxu1 %v2783_v14 }
 0x13a   :  { %v288_v0 = vrot.slane %v274_v56, %v2983_v41  ;;  %v289_v1 = vcombine.high %v281_v63, %v281_v63  ;;  %v297_v43 = vrot.slane %v281_v63, %v2983_v41  ;;  %2011 = vst.sshfl [vmem:[#allocation8] sm:$0x1 pattern:$0x73625140] %v281_v63  ;;  %578 = vmatprep.subr.mxu0 %v2751_v3  ;;  %v3635_v56 = vld [vmem:[#allocation15_spill] sm:$0xff]  ;;  %v340_v63 = vld [vmem:[#allocation3 + $0x18] sm:$0xff] }
 0x13b   :  { %2265 = vmatprep.subr.mxu1 %v3631_v48  ;;  %579 = vmatpush1.msra.mxu0 %v2754_v4 }
 0x13c   :  { %2266 = vmatpush3.msra.mxu1 %v2789_v16  ;;  %v290_v49 = vcombine.high %v288_v0, %v288_v0  ;;  %v304_v50 = vrot.slane %v288_v0, %v2983_v41  ;;  %v311_v51 = vrot.slane %v289_v1, %v2983_v41  ;;  %v319_v52 = vcombine.high %v297_v43, %v297_v43 }
 0x13d   :  { %2012 = vst.sshfl [vmem:[#allocation8 + $0x8] sm:$0x1 pattern:$0x73625140] %v289_v1  ;;  %580 = vmatprep.subr.mxu0 %v2757_v5  ;;  %2267 = vmatprep.subr.mxu1 %v3631_v48 }
 0x13e   :  { %2013 = vst.sshfl [vmem:[#allocation8 + $0x20] sm:$0x1 pattern:$0x73625140] %v288_v0  ;;  %581 = vmatpush1.msra.mxu0 %v2760_v6  ;;  %v318_v53 = vrot.slane %v290_v49, %v2983_v41  ;;  %v320_v54 = vcombine.high %v304_v50, %v304_v50  ;;  %v321_v55 = vcombine.high %v311_v51, %v311_v51  ;;  %333 = vst [vmem:[#allocation8 + $0x10] sm:$0x1] %v319_v52 }
 0x13f   :  { %2014 = vst.sshfl [vmem:[#allocation8 + $0x28] sm:$0x1 pattern:$0x73625140] %v290_v49  ;;  %2268 = vmatpush3.msra.mxu1 %v2795_v18  ;;  %582 = vmatprep.subr.mxu0 %v2763_v7  ;;  %v341_v51 = vld [vmem:[#allocation3 + $0x20] sm:$0xff] }
 0x140   :  { %2269 = vmatprep.subr.mxu1 %v3631_v48  ;;  %583 = vmatpush1.msra.mxu0 %v2766_v8  ;;  %v322_v57 = vcombine.high %v318_v53, %v318_v53  ;;  %334 = vst [vmem:[#allocation8 + $0x18] sm:$0x1] %v321_v55  ;;  %337 = vst [vmem:[#allocation8 + $0x30] sm:$0x1] %v320_v54 }
 0x141   :  { %2270 = vmatpush3.msra.mxu1 %v2805_v21  ;;  %584 = vmatprep.subr.mxu0 %v2769_v9 }
 0x142   :  { %2271 = vmatprep.subr.mxu1 %v3631_v48  ;;  %585 = vmatpush1.msra.mxu0 %v2772_v10  ;;  %338 = vst [vmem:[#allocation8 + $0x38] sm:$0x1] %v322_v57 }
 0x143   :  { %2272 = vmatpush3.msra.mxu1 %v2815_v24  ;;  %586 = vmatprep.subr.mxu0 %v2775_v11 }
 0x144   :  { %2273 = vmatprep.subr.mxu1 %v3631_v48  ;;  %587 = vmatpush1.msra.mxu0 %v2778_v12 }
 0x145   :  { %2274 = vmatpush3.msra.mxu1 %v2825_v27  ;;  %588 = vmatprep.subr.mxu0 %v2781_v13 }
 0x146   :  { %2275 = vmatprep.subr.mxu1 %v3631_v48  ;;  %589 = vmatpush1.msra.mxu0 %v2786_v15 }
 0x147   :  { %2276 = vmatpush3.msra.mxu1 %v2835_v30  ;;  %590 = vmatprep.subr.mxu0 %v2792_v17 }
 0x148   :  { %2277 = vmatprep.subr.mxu1 %v3631_v48  ;;  %591 = vmatpush1.msra.mxu0 %v2798_v19 }
 0x149   :  { %2278 = vmatpush3.msra.mxu1 %v2845_v33  ;;  %592 = vmatprep.subr.mxu0 %v2802_v20 }
 0x14a   :  { %2279 = vmatprep.subr.mxu1 %v3631_v48  ;;  %593 = vmatpush1.msra.mxu0 %v2808_v22 }
 0x14b   :  { %2280 = vmatpush3.msra.mxu1 %v2855_v36  ;;  %594 = vmatprep.subr.mxu0 %v2812_v23 }
 0x14c   :  { %2281 = vmatprep.subr.mxu1 %v3631_v48  ;;  %595 = vmatpush1.msra.mxu0 %v2818_v25 }
 0x14d   :  { %2282 = vmatpush3.msra.mxu1 %v2865_v39  ;;  %596 = vmatprep.subr.mxu0 %v2822_v26 }
 0x14e   :  { %2283 = vmatprep.subr.mxu1 %v3631_v48  ;;  %597 = vmatpush1.msra.mxu0 %v2828_v28 }
 0x14f   :  { %2284 = vmatpush3.msra.mxu1 %v2875_v42  ;;  %598 = vmatprep.subr.mxu0 %v2832_v29 }
 0x150   :  { %2285 = vmatprep.subr.mxu1 %v3631_v48  ;;  %599 = vmatpush1.msra.mxu0 %v2838_v31 }
 0x151   :  { %2286 = vmatpush3.msra.mxu1 %v2883_v44  ;;  %600 = vmatprep.subr.mxu0 %v2842_v32 }
 0x152   :  { %2287 = vmatprep.subr.mxu1 %v3631_v48  ;;  %601 = vmatpush1.msra.mxu0 %v2848_v34 }
 0x153   :  { %2288 = vmatpush3.msra.mxu1 %v2889_v45  ;;  %602 = vmatprep.subr.mxu0 %v2852_v35 }
 0x154   :  { %2289 = vmatprep.subr.mxu1 %v3631_v48  ;;  %603 = vmatpush1.msra.mxu0 %v2858_v37 }
 0x155   :  { %2290 = vmatpush3.msra.mxu1 %v2894_v46  ;;  %604 = vmatprep.subr.mxu0 %v2862_v38 }
 0x156   :  { %2291 = vmatprep.subr.mxu1 %v3631_v48  ;;  %605 = vmatpush1.msra.mxu0 %v2868_v40 }
 0x157   :  { %2292 = vmatpush3.msra.mxu1 %v2900_v47  ;;  %606 = vmatprep.subr.mxu0 %v3632_v58  ;;  %v342_v47 = vld [vmem:[#allocation3 + $0x28] sm:$0xff] }
 0x158   :  { %2293 = vmatprep.subr.mxu1 %v3631_v48  ;;  %607 = vmatpush1.msra.mxu0 %v3633_v59 }
 0x159   :  { %640 = vmatprep.mubr.f32.mxu0 %v3631_v48  ;;  %2294 = vmatpush3.msra.mxu1 %v3634_v60 }
 0x15a   :  { %2295 = vmatprep.mubr.msk.f32.mxu1 %vm2706_vm0, %v3631_v48  ;;  %809 = vmatprep.subr.mxu0 %v3635_v56 }
 0x15b   :  { %2298 = vmatprep.subr.mxu1 %v3631_v48 }
 0x1f8   :  { %v409_v0 = vpop.f32.mrf.mxu0  ;;  %v480_v1 = vpop.f32.mrf.mxu1 }
 0x1f9   :  { %v484_v43 = vadd.f32 %v409_v0, %v340_v63  ;;  %v498_v56 = vadd.f32 %v2980_v62, %v480_v1 }
 0x1fa   :  { %v2262_v49 = vpop.f32.mrf.mxu1  ;;  %v411_v52 = vpop.f32.mrf.mxu0 }
 0x1fb   :  { %v2015_v50 = vmul.f32 -1.442695, %v484_v43  ;;  %v491_v53 = vadd.f32 %v411_v52, %v341_v51 }
 0x1fd   :  { %2494 = vpow2.f32 %v2015_v50  ;;  %v2016_v54 = vmul.f32 -1.442695, %v491_v53 }
 0x1ff   :  { %2496 = vpow2.f32 %v2016_v54 }
 0x20a   :  { %v2495_v55 = vpop.eup %2494 }
 0x20b   :  { %v488_v57 = vadd.f32 1.0, %v2495_v55 }
 0x20c   :  { %v2497_v60 = vpop.eup %2496 }
 0x20d   :  { %2498 = vrcp.f32 %v488_v57  ;;  %v495_v59 = vadd.f32 1.0, %v2497_v60 }
 0x20f   :  { %2500 = vrcp.f32 %v495_v59 }
 0x21a   :  { %v2499_v58 = vpop.eup %2498 }
 0x21b   :  { %v499_v40 = vmul.f32 %v2499_v58, %v498_v56 }
 0x21c   :  { %v2501_v0 = vpop.eup %2500 }
 0x21d   :  { %v500_v63 = vadd.f32 %v499_v40, %v342_v47  ;;  %v502_v43 = vsub.f32 1.0, %v2501_v0  ;;  %v504_v51 = vmul.f32 %v2501_v0, %v2985_v61  ;;  %v3636_v0 = vld [vmem:[#allocation16_spill] sm:$0xff] }
 0x21f   :  { %2502 = vtanh.f32 %v500_v63 }
 0x22c   :  { %v2503_v49 = vpop.eup %2502 }
 0x22d   :  { %v503_v50 = vmul.f32 %v2503_v49, %v502_v43  ;;  %v3637_v43 = vld [vmem:[#allocation19_spill] sm:$0xff]  ;;  %v3638_v49 = vld [vmem:[#allocation17_spill] sm:$0xff] }
 0x22f   :  { %v3067_v52 = vadd.f32 %v504_v51, %v503_v50  ;;  %v3639_v50 = vld [vmem:[#allocation18_spill] sm:$0xff]  ;;  %v3640_v51 = vld [vmem:[#allocation20_spill] sm:$0xff] }
 0x231   :  { %v507_v53 = vcombine.high %v3067_v52, %v3067_v52  ;;  %v514_v60 = vrot.slane %v3067_v52, %v2983_v41  ;;  %641 = vmatmul.mubr.f32.vlgmr.msra.gmra.mxu0 %v3067_v52  ;;  %2296 = vmatmul.mubr.f32.vlgmr.msra.gmra.mxu1 %v3067_v52 }
 0x232   :  { %810 = vmatpush1.msra.mxu0 %v2749_v2  ;;  %2299 = vmatpush3.msra.mxu1 %v2783_v14 }
 0x233   :  { %v521_v40 = vrot.slane %v507_v53, %v2983_v41  ;;  %v522_v47 = vcombine.high %v514_v60, %v514_v60  ;;  %v530_v61 = vrot.slane %v514_v60, %v2983_v41  ;;  %2017 = vst.sshfl [vmem:[#allocation8 + $0x1] sm:$0x1 pattern:$0x73625140] %v514_v60  ;;  %811 = vmatprep.subr.mxu0 %v2751_v3  ;;  %v3641_v53 = vld [vmem:[#allocation15_spill] sm:$0xff]  ;;  %v573_v60 = vld [vmem:[#allocation3 + $0x30] sm:$0xff] }
 0x234   :  { %2300 = vmatprep.subr.mxu1 %v3631_v48  ;;  %812 = vmatpush1.msra.mxu0 %v2754_v4 }
 0x235   :  { %2301 = vmatpush3.msra.mxu1 %v2789_v16  ;;  %v523_v58 = vcombine.high %v521_v40, %v521_v40  ;;  %v537_v59 = vrot.slane %v521_v40, %v2983_v41  ;;  %v544_v56 = vrot.slane %v522_v47, %v2983_v41  ;;  %v552_v1 = vcombine.high %v530_v61, %v530_v61 }
 0x236   :  { %2018 = vst.sshfl [vmem:[#allocation8 + $0x9] sm:$0x1 pattern:$0x73625140] %v522_v47  ;;  %813 = vmatprep.subr.mxu0 %v2757_v5  ;;  %2302 = vmatprep.subr.mxu1 %v3631_v48 }
 0x237   :  { %2019 = vst.sshfl [vmem:[#allocation8 + $0x21] sm:$0x1 pattern:$0x73625140] %v521_v40  ;;  %814 = vmatpush1.msra.mxu0 %v2760_v6  ;;  %v551_v54 = vrot.slane %v523_v58, %v2983_v41  ;;  %v553_v55 = vcombine.high %v537_v59, %v537_v59  ;;  %v554_v57 = vcombine.high %v544_v56, %v544_v56  ;;  %566 = vst [vmem:[#allocation8 + $0x11] sm:$0x1] %v552_v1 }
 0x238   :  { %2020 = vst.sshfl [vmem:[#allocation8 + $0x29] sm:$0x1 pattern:$0x73625140] %v523_v58  ;;  %2303 = vmatpush3.msra.mxu1 %v2795_v18  ;;  %815 = vmatprep.subr.mxu0 %v2763_v7  ;;  %v574_v56 = vld [vmem:[#allocation3 + $0x38] sm:$0xff] }
 0x239   :  { %2304 = vmatprep.subr.mxu1 %v3631_v48  ;;  %816 = vmatpush1.msra.mxu0 %v2766_v8  ;;  %v555_v63 = vcombine.high %v551_v54, %v551_v54  ;;  %567 = vst [vmem:[#allocation8 + $0x19] sm:$0x1] %v554_v57  ;;  %570 = vst [vmem:[#allocation8 + $0x31] sm:$0x1] %v553_v55 }
 0x23a   :  { %2305 = vmatpush3.msra.mxu1 %v2805_v21  ;;  %817 = vmatprep.subr.mxu0 %v2769_v9 }
 0x23b   :  { %2306 = vmatprep.subr.mxu1 %v3631_v48  ;;  %818 = vmatpush1.msra.mxu0 %v2772_v10  ;;  %571 = vst [vmem:[#allocation8 + $0x39] sm:$0x1] %v555_v63 }
 0x23c   :  { %2307 = vmatpush3.msra.mxu1 %v2815_v24  ;;  %819 = vmatprep.subr.mxu0 %v2775_v11 }
 0x23d   :  { %2308 = vmatprep.subr.mxu1 %v3631_v48  ;;  %820 = vmatpush1.msra.mxu0 %v2778_v12 }
 0x23e   :  { %2309 = vmatpush3.msra.mxu1 %v2825_v27  ;;  %821 = vmatprep.subr.mxu0 %v2781_v13 }
 0x23f   :  { %2310 = vmatprep.subr.mxu1 %v3631_v48  ;;  %822 = vmatpush1.msra.mxu0 %v2786_v15 }
 0x240   :  { %2311 = vmatpush3.msra.mxu1 %v2835_v30  ;;  %823 = vmatprep.subr.mxu0 %v2792_v17 }
 0x241   :  { %2312 = vmatprep.subr.mxu1 %v3631_v48  ;;  %824 = vmatpush1.msra.mxu0 %v2798_v19 }
 0x242   :  { %2313 = vmatpush3.msra.mxu1 %v2845_v33  ;;  %825 = vmatprep.subr.mxu0 %v2802_v20 }
 0x243   :  { %2314 = vmatprep.subr.mxu1 %v3631_v48  ;;  %826 = vmatpush1.msra.mxu0 %v2808_v22 }
 0x244   :  { %2315 = vmatpush3.msra.mxu1 %v2855_v36  ;;  %827 = vmatprep.subr.mxu0 %v2812_v23 }
 0x245   :  { %2316 = vmatprep.subr.mxu1 %v3631_v48  ;;  %828 = vmatpush1.msra.mxu0 %v2818_v25 }
 0x246   :  { %2317 = vmatpush3.msra.mxu1 %v2865_v39  ;;  %829 = vmatprep.subr.mxu0 %v2822_v26 }
 0x247   :  { %2318 = vmatprep.subr.mxu1 %v3631_v48  ;;  %830 = vmatpush1.msra.mxu0 %v2828_v28 }
 0x248   :  { %2319 = vmatpush3.msra.mxu1 %v2875_v42  ;;  %831 = vmatprep.subr.mxu0 %v2832_v29 }
 0x249   :  { %2320 = vmatprep.subr.mxu1 %v3631_v48  ;;  %832 = vmatpush1.msra.mxu0 %v2838_v31 }
 0x24a   :  { %2321 = vmatpush3.msra.mxu1 %v2883_v44  ;;  %833 = vmatprep.subr.mxu0 %v2842_v32 }
 0x24b   :  { %2322 = vmatprep.subr.mxu1 %v3631_v48  ;;  %834 = vmatpush1.msra.mxu0 %v2848_v34 }
 0x24c   :  { %2323 = vmatpush3.msra.mxu1 %v2889_v45  ;;  %835 = vmatprep.subr.mxu0 %v2852_v35 }
 0x24d   :  { %2324 = vmatprep.subr.mxu1 %v3631_v48  ;;  %836 = vmatpush1.msra.mxu0 %v2858_v37 }
 0x24e   :  { %2325 = vmatpush3.msra.mxu1 %v2894_v46  ;;  %837 = vmatprep.subr.mxu0 %v2862_v38 }
 0x24f   :  { %2326 = vmatprep.subr.mxu1 %v3631_v48  ;;  %838 = vmatpush1.msra.mxu0 %v3636_v0 }
 0x250   :  { %2327 = vmatpush3.msra.mxu1 %v3637_v43  ;;  %839 = vmatprep.subr.mxu0 %v3638_v49  ;;  %v575_v43 = vld [vmem:[#allocation3 + $0x40] sm:$0xff] }
 0x251   :  { %2328 = vmatprep.subr.mxu1 %v3631_v48  ;;  %840 = vmatpush1.msra.mxu0 %v3639_v50 }
 0x252   :  { %873 = vmatprep.mubr.f32.mxu0 %v3631_v48  ;;  %2329 = vmatpush3.msra.mxu1 %v3640_v51 }
 0x253   :  { %2330 = vmatprep.mubr.msk.f32.mxu1 %vm2706_vm0, %v3631_v48  ;;  %1042 = vmatprep.subr.mxu0 %v3641_v53 }
 0x254   :  { %2333 = vmatprep.subr.mxu1 %v3631_v48 }
 0x2f1   :  { %v642_v40 = vpop.f32.mrf.mxu0  ;;  %v713_v47 = vpop.f32.mrf.mxu1 }
 0x2f2   :  { %v717_v61 = vadd.f32 %v642_v40, %v573_v60  ;;  %v731_v53 = vadd.f32 %v2980_v62, %v713_v47 }
 0x2f3   :  { %v2297_v58 = vpop.f32.mrf.mxu1  ;;  %v644_v1 = vpop.f32.mrf.mxu0 }
 0x2f4   :  { %v2021_v59 = vmul.f32 -1.442695, %v717_v61  ;;  %v724_v54 = vadd.f32 %v644_v1, %v574_v56 }
 0x2f6   :  { %2504 = vpow2.f32 %v2021_v59  ;;  %v2022_v55 = vmul.f32 -1.442695, %v724_v54 }
 0x2f8   :  { %2506 = vpow2.f32 %v2022_v55 }
 0x303   :  { %v2505_v57 = vpop.eup %2504 }
 0x304   :  { %v721_v63 = vadd.f32 1.0, %v2505_v57  ;;  %v3249_v57 = vld [vmem:[#allocation6 + $0x158] sm:$0xff] }
 0x305   :  { %v2507_v51 = vpop.eup %2506 }
 0x306   :  { %2508 = vrcp.f32 %v721_v63  ;;  %v728_v50 = vadd.f32 1.0, %v2507_v51  ;;  %v3253_v63 = vld [vmem:[#allocation6 + $0x150] sm:$0xff] }
 0x308   :  { %2510 = vrcp.f32 %v728_v50 }
 0x313   :  { %v2509_v49 = vpop.eup %2508 }
 0x314   :  { %v732_v0 = vmul.f32 %v2509_v49, %v731_v53  ;;  %v3256_v53 = vld [vmem:[#allocation6 + $0x160] sm:$0xff] }
 0x315   :  { %v2511_v40 = vpop.eup %2510 }
 0x316   :  { %v733_v60 = vadd.f32 %v732_v0, %v575_v43  ;;  %v735_v61 = vsub.f32 1.0, %v2511_v40  ;;  %v737_v56 = vmul.f32 %v2511_v40, %v3067_v52 }
 0x318   :  { %2512 = vtanh.f32 %v733_v60 }
 0x325   :  { %v2513_v58 = vpop.eup %2512 }
 0x326   :  { %v736_v59 = vmul.f32 %v2513_v58, %v735_v61 }
 0x328   :  { %v3149_v1 = vadd.f32 %v737_v56, %v736_v59  ;;  %v3261_v59 = vld [vmem:[#allocation6 + $0x140] sm:$0xff]  ;;  %v3265_v56 = vld [vmem:[#allocation6 + $0x138] sm:$0xff] }
 0x32a   :  { %v740_v54 = vcombine.high %v3149_v1, %v3149_v1  ;;  %v747_v51 = vrot.slane %v3149_v1, %v2983_v41  ;;  %874 = vmatmul.mubr.f32.vlgmr.msra.gmra.mxu0 %v3149_v1  ;;  %2331 = vmatmul.mubr.f32.vlgmr.msra.gmra.mxu1 %v3149_v1 }
 0x32b   :  { %1043 = vmatpush1.msra.mxu0 %v2749_v2  ;;  %2334 = vmatpush3.msra.mxu1 %v2783_v14 }
 0x32c   :  { %v754_v0 = vrot.slane %v740_v54, %v2983_v41  ;;  %v755_v43 = vcombine.high %v747_v51, %v747_v51  ;;  %v763_v52 = vrot.slane %v747_v51, %v2983_v41  ;;  %2023 = vst.sshfl [vmem:[#allocation8 + $0x2] sm:$0x1 pattern:$0x73625140] %v747_v51  ;;  %1044 = vmatprep.subr.mxu0 %v2751_v3 }
 0x32d   :  { %2335 = vmatprep.subr.mxu1 %v3631_v48  ;;  %1045 = vmatpush1.msra.mxu0 %v2754_v4 }
 0x32e   :  { %2336 = vmatpush3.msra.mxu1 %v2789_v16  ;;  %v756_v49 = vcombine.high %v754_v0, %v754_v0  ;;  %v770_v50 = vrot.slane %v754_v0, %v2983_v41  ;;  %v777_v2 = vrot.slane %v755_v43, %v2983_v41  ;;  %v785_v14 = vcombine.high %v763_v52, %v763_v52  ;;  %v3276_v52 = vld [vmem:[#allocation6 + $0x120] sm:$0xff] }
 0x32f   :  { %2024 = vst.sshfl [vmem:[#allocation8 + $0xa] sm:$0x1 pattern:$0x73625140] %v755_v43  ;;  %1046 = vmatprep.subr.mxu0 %v2757_v5  ;;  %2337 = vmatprep.subr.mxu1 %v3631_v48  ;;  %v3642_v5 = vld [vmem:[#allocation16_spill] sm:$0xff]  ;;  %v3272_v43 = vld [vmem:[#allocation6 + $0x128] sm:$0xff] }
 0x330   :  { %2025 = vst.sshfl [vmem:[#allocation8 + $0x22] sm:$0x1 pattern:$0x73625140] %v754_v0  ;;  %1047 = vmatpush1.msra.mxu0 %v2760_v6  ;;  %v784_v3 = vrot.slane %v756_v49, %v2983_v41  ;;  %v786_v47 = vcombine.high %v770_v50, %v770_v50  ;;  %v787_v4 = vcombine.high %v777_v2, %v777_v2  ;;  %799 = vst [vmem:[#allocation8 + $0x12] sm:$0x1] %v785_v14 }
 0x331   :  { %2026 = vst.sshfl [vmem:[#allocation8 + $0x2a] sm:$0x1 pattern:$0x73625140] %v756_v49  ;;  %2338 = vmatpush3.msra.mxu1 %v2795_v18  ;;  %1048 = vmatprep.subr.mxu0 %v2763_v7  ;;  %v3643_v6 = vld [vmem:[#allocation19_spill] sm:$0xff]  ;;  %v3644_v7 = vld [vmem:[#allocation17_spill] sm:$0xff] }
 0x332   :  { %2339 = vmatprep.subr.mxu1 %v3631_v48  ;;  %1049 = vmatpush1.msra.mxu0 %v2766_v8  ;;  %v788_v16 = vcombine.high %v784_v3, %v784_v3  ;;  %800 = vst [vmem:[#allocation8 + $0x1a] sm:$0x1] %v787_v4  ;;  %803 = vst [vmem:[#allocation8 + $0x32] sm:$0x1] %v786_v47  ;;  %v3645_v8 = vld [vmem:[#allocation18_spill] sm:$0xff]  ;;  %v3269_v0 = vld [vmem:[#allocation6 + $0x148] sm:$0xff] }
 0x333   :  { %2340 = vmatpush3.msra.mxu1 %v2805_v21  ;;  %1050 = vmatprep.subr.mxu0 %v2769_v9  ;;  %v3646_v9 = vld [vmem:[#allocation20_spill] sm:$0xff]  ;;  %v3286_v14 = vld [vmem:[#allocation6 + $0x108] sm:$0xff]  ;;  %v3289_v3 = vld [vmem:[#allocation6 + $0x118] sm:$0xff] }
 0x334   :  { %2341 = vmatprep.subr.mxu1 %v3631_v48  ;;  %1051 = vmatpush1.msra.mxu0 %v2772_v10  ;;  %804 = vst [vmem:[#allocation8 + $0x3a] sm:$0x1] %v788_v16  ;;  %v3227_v10 = vld [vmem:[#allocation6 + $0x170] sm:$0xff]  ;;  %v3292_v47 = vld [vmem:[#allocation6 + $0xf8] sm:$0xff]  ;;  %v3299_v16 = vld [vmem:[#allocation6 + $0x100] sm:$0xff] }
 0x335   :  { %2342 = vmatpush3.msra.mxu1 %v2815_v24  ;;  %1052 = vmatprep.subr.mxu0 %v2775_v11  ;;  %3647 = vst [vmem:[#allocation15_spill] sm:$0xff] %v3227_v10  ;;  %v806_v11 = vld [vmem:[#allocation3 + $0x48] sm:$0xff]  ;;  %v3279_v50 = vld [vmem:[#allocation6 + $0x130] sm:$0xff] }
 0x336   :  { %2343 = vmatprep.subr.mxu1 %v3631_v48  ;;  %1053 = vmatpush1.msra.mxu0 %v2778_v12  ;;  %v3282_v2 = vld [vmem:[#allocation6 + $0x110] sm:$0xff] }
 0x337   :  { %2344 = vmatpush3.msra.mxu1 %v2825_v27  ;;  %1054 = vmatprep.subr.mxu0 %v2781_v13  ;;  %v3296_v4 = vld [vmem:[#allocation6 + $0xf0] sm:$0xff] }
 0x338   :  { %2345 = vmatprep.subr.mxu1 %v3631_v48  ;;  %1055 = vmatpush1.msra.mxu0 %v2786_v15 }
 0x339   :  { %2346 = vmatpush3.msra.mxu1 %v2835_v30  ;;  %1056 = vmatprep.subr.mxu0 %v2792_v17 }
 0x33a   :  { %2347 = vmatprep.subr.mxu1 %v3631_v48  ;;  %1057 = vmatpush1.msra.mxu0 %v2798_v19  ;;  %v807_v19 = vld [vmem:[#allocation3 + $0x50] sm:$0xff] }
 0x33b   :  { %2348 = vmatpush3.msra.mxu1 %v2845_v33  ;;  %1058 = vmatprep.subr.mxu0 %v2802_v20 }
 0x33c   :  { %2349 = vmatprep.subr.mxu1 %v3631_v48  ;;  %1059 = vmatpush1.msra.mxu0 %v2808_v22 }
 0x33d   :  { %2350 = vmatpush3.msra.mxu1 %v2855_v36  ;;  %1060 = vmatprep.subr.mxu0 %v2812_v23 }
 0x33e   :  { %2351 = vmatprep.subr.mxu1 %v3631_v48  ;;  %1061 = vmatpush1.msra.mxu0 %v2818_v25 }
 0x33f   :  { %2352 = vmatpush3.msra.mxu1 %v2865_v39  ;;  %1062 = vmatprep.subr.mxu0 %v2822_v26 }
 0x340   :  { %2353 = vmatprep.subr.mxu1 %v3631_v48  ;;  %1063 = vmatpush1.msra.mxu0 %v2828_v28 }
 0x341   :  { %2354 = vmatpush3.msra.mxu1 %v2875_v42  ;;  %1064 = vmatprep.subr.mxu0 %v2832_v29  ;;  %v808_v29 = vld [vmem:[#allocation3 + $0x58] sm:$0xff]  ;;  %v3241_v42 = vld [vmem:[#allocation6 + $0x168] sm:$0xff] }
 0x342   :  { %2355 = vmatprep.subr.mxu1 %v3631_v48  ;;  %1065 = vmatpush1.msra.mxu0 %v2838_v31 }
 0x343   :  { %2356 = vmatpush3.msra.mxu1 %v2883_v44  ;;  %1066 = vmatprep.subr.mxu0 %v2842_v32  ;;  %v3244_v44 = vld [vmem:[#allocation6 + $0x178] sm:$0xff] }
 0x344   :  { %2357 = vmatprep.subr.mxu1 %v3631_v48  ;;  %1067 = vmatpush1.msra.mxu0 %v2848_v34 }
 0x345   :  { %2358 = vmatpush3.msra.mxu1 %v2889_v45  ;;  %1068 = vmatprep.subr.mxu0 %v2852_v35 }
 0x346   :  { %2359 = vmatprep.subr.mxu1 %v3631_v48  ;;  %1069 = vmatpush1.msra.mxu0 %v2858_v37 }
 0x347   :  { %2360 = vmatpush3.msra.mxu1 %v2894_v46  ;;  %1070 = vmatprep.subr.mxu0 %v2862_v38 }
 0x348   :  { %2361 = vmatprep.subr.mxu1 %v3631_v48  ;;  %1071 = vmatpush1.msra.mxu0 %v3642_v5  ;;  %v3302_v5 = vld [vmem:[#allocation6 + $0xe0] sm:$0xff] }
 0x349   :  { %2362 = vmatpush3.msra.mxu1 %v3643_v6  ;;  %1072 = vmatprep.subr.mxu0 %v3644_v7  ;;  %v3306_v6 = vld [vmem:[#allocation6 + $0xd8] sm:$0xff]  ;;  %v3309_v7 = vld [vmem:[#allocation6 + $0xe8] sm:$0xff] }
 0x34a   :  { %2363 = vmatprep.subr.mxu1 %v3631_v48  ;;  %1073 = vmatpush1.msra.mxu0 %v3645_v8  ;;  %v3312_v8 = vld [vmem:[#allocation6 + $0xc8] sm:$0xff] }
 0x34b   :  { %1106 = vmatprep.mubr.f32.mxu0 %v3631_v48  ;;  %2364 = vmatpush3.msra.mxu1 %v3646_v9  ;;  %v3316_v9 = vld [vmem:[#allocation6 + $0xc0] sm:$0xff] }
 0x34c   :  { %2365 = vmatprep.mubr.msk.f32.mxu1 %vm2706_vm0, %v3631_v48  ;;  %1275 = vmatprep.subr.mxu0 %v3227_v10 }
 0x34d   :  { %2368 = vmatprep.subr.mxu1 %v3631_v48 }
 0x3ea   :  { %v875_v12 = vpop.f32.mrf.mxu0  ;;  %v946_v13 = vpop.f32.mrf.mxu1 }
 0x3eb   :  { %v950_v15 = vadd.f32 %v875_v12, %v806_v11  ;;  %v964_v27 = vadd.f32 %v2980_v62, %v946_v13  ;;  %v3319_v11 = vld [vmem:[#allocation6 + $0xd0] sm:$0xff]  ;;  %v3326_v13 = vld [vmem:[#allocation6 + $0xa8] sm:$0xff] }
 0x3ec   :  { %v2332_v17 = vpop.f32.mrf.mxu1  ;;  %v877_v20 = vpop.f32.mrf.mxu0  ;;  %v3322_v12 = vld [vmem:[#allocation6 + $0xb0] sm:$0xff] }
 0x3ed   :  { %v2027_v18 = vmul.f32 -1.442695, %v950_v15  ;;  %v957_v21 = vadd.f32 %v877_v20, %v807_v19  ;;  %v3329_v15 = vld [vmem:[#allocation6 + $0xb8] sm:$0xff]  ;;  %v3339_v19 = vld [vmem:[#allocation6 + $0xa0] sm:$0xff] }
 0x3ee   :  { %v3332_v17 = vld [vmem:[#allocation6 + $0x98] sm:$0xff]  ;;  %v3342_v20 = vld [vmem:[#allocation6 + $0x80] sm:$0xff] }
 0x3ef   :  { %2514 = vpow2.f32 %v2027_v18  ;;  %v2028_v22 = vmul.f32 -1.442695, %v957_v21  ;;  %v3336_v18 = vld [vmem:[#allocation6 + $0x90] sm:$0xff]  ;;  %v3346_v21 = vld [vmem:[#allocation6 + $0x78] sm:$0xff] }
 0x3f1   :  { %2516 = vpow2.f32 %v2028_v22  ;;  %v3349_v22 = vld [vmem:[#allocation6 + $0x88] sm:$0xff] }
 0x3fc   :  { %v2515_v23 = vpop.eup %2514 }
 0x3fd   :  { %v954_v24 = vadd.f32 1.0, %v2515_v23  ;;  %v3352_v23 = vld [vmem:[#allocation6 + $0x68] sm:$0xff] }
 0x3fe   :  { %v2517_v25 = vpop.eup %2516 }
 0x3ff   :  { %2518 = vrcp.f32 %v954_v24  ;;  %v961_v26 = vadd.f32 1.0, %v2517_v25  ;;  %v3356_v24 = vld [vmem:[#allocation6 + $0x60] sm:$0xff]  ;;  %v3359_v25 = vld [vmem:[#allocation6 + $0x70] sm:$0xff] }
 0x401   :  { %2520 = vrcp.f32 %v961_v26  ;;  %v3362_v26 = vld [vmem:[#allocation6 + $0x50] sm:$0xff] }
 0x40c   :  { %v2519_v28 = vpop.eup %2518 }
 0x40d   :  { %v965_v30 = vmul.f32 %v2519_v28, %v964_v27  ;;  %v3366_v27 = vld [vmem:[#allocation6 + $0x48] sm:$0xff]  ;;  %v3369_v28 = vld [vmem:[#allocation6 + $0x58] sm:$0xff] }
 0x40e   :  { %v2521_v32 = vpop.eup %2520 }
 0x40f   :  { %v966_v31 = vadd.f32 %v965_v30, %v808_v29  ;;  %v968_v33 = vsub.f32 1.0, %v2521_v32  ;;  %v970_v36 = vmul.f32 %v2521_v32, %v3149_v1  ;;  %v3372_v29 = vld [vmem:[#allocation6 + $0x38] sm:$0xff]  ;;  %v3376_v30 = vld [vmem:[#allocation6 + $0x30] sm:$0xff]  ;;  %v3382_v32 = vld [vmem:[#allocation6 + $0x20] sm:$0xff] }
 0x411   :  { %2522 = vtanh.f32 %v966_v31  ;;  %v3379_v31 = vld [vmem:[#allocation6 + $0x40] sm:$0xff] }
 0x41e   :  { %v2523_v34 = vpop.eup %2522 }
 0x41f   :  { %v969_v35 = vmul.f32 %v2523_v34, %v968_v33  ;;  %v3386_v33 = vld [vmem:[#allocation6 + $0x18] sm:$0xff]  ;;  %v3389_v34 = vld [vmem:[#allocation6 + $0x28] sm:$0xff] }
 0x420   :  { %3648 = vst [vmem:[#allocation16_spill] sm:$0xff] %v3386_v33  ;;  %3649 = vst [vmem:[#allocation19_spill] sm:$0xff] %v3389_v34 }
 0x421   :  { %v3233_v37 = vadd.f32 %v970_v36, %v969_v35  ;;  %v3392_v35 = vld [vmem:[#allocation6 + $0x8] sm:$0xff]  ;;  %v3396_v36 = vld [vmem:[#allocation6] sm:$0xff] }
 0x422   :  { %3650 = vst [vmem:[#allocation17_spill] sm:$0xff] %v3392_v35  ;;  %3651 = vst [vmem:[#allocation18_spill] sm:$0xff] %v3396_v36 }
 0x423   :  { %v973_v38 = vcombine.high %v3233_v37, %v3233_v37  ;;  %v980_v39 = vrot.slane %v3233_v37, %v2983_v41  ;;  %1107 = vmatmul.mubr.f32.vlgmr.msra.gmra.mxu0 %v3233_v37  ;;  %2366 = vmatmul.mubr.f32.vlgmr.msra.gmra.mxu1 %v3233_v37 }
 0x424   :  { %1276 = vmatpush1.msra.mxu0 %v3241_v42  ;;  %2369 = vmatpush3.msra.mxu1 %v3244_v44 }
 0x425   :  { %v987_v45 = vrot.slane %v973_v38, %v2983_v41  ;;  %v988_v46 = vcombine.high %v980_v39, %v980_v39  ;;  %v996_v55 = vrot.slane %v980_v39, %v2983_v41  ;;  %2029 = vst.sshfl [vmem:[#allocation8 + $0x3] sm:$0x1 pattern:$0x73625140] %v980_v39  ;;  %1277 = vmatprep.subr.mxu0 %v3249_v57  ;;  %v3400_v38 = vld [vmem:[#allocation6 + $0x10] sm:$0xff]  ;;  %v1039_v39 = vld [vmem:[#allocation3 + $0x60] sm:$0xff] }
 0x426   :  { %2370 = vmatprep.subr.mxu1 %v3631_v48  ;;  %1278 = vmatpush1.msra.mxu0 %v3253_v63  ;;  %3652 = vst [vmem:[#allocation20_spill] sm:$0xff] %v3400_v38 }
 0x427   :  { %2371 = vmatpush3.msra.mxu1 %v3256_v53  ;;  %v989_v60 = vcombine.high %v987_v45, %v987_v45  ;;  %v1003_v40 = vrot.slane %v987_v45, %v2983_v41  ;;  %v1010_v61 = vrot.slane %v988_v46, %v2983_v41  ;;  %v1018_v58 = vcombine.high %v996_v55, %v996_v55 }
 0x428   :  { %2030 = vst.sshfl [vmem:[#allocation8 + $0xb] sm:$0x1 pattern:$0x73625140] %v988_v46  ;;  %1279 = vmatprep.subr.mxu0 %v3261_v59  ;;  %2372 = vmatprep.subr.mxu1 %v3631_v48 }
 0x429   :  { %2031 = vst.sshfl [vmem:[#allocation8 + $0x23] sm:$0x1 pattern:$0x73625140] %v987_v45  ;;  %1280 = vmatpush1.msra.mxu0 %v3265_v56  ;;  %v1017_v1 = vrot.slane %v989_v60, %v2983_v41  ;;  %v1019_v54 = vcombine.high %v1003_v40, %v1003_v40  ;;  %v1020_v51 = vcombine.high %v1010_v61, %v1010_v61  ;;  %1032 = vst [vmem:[#allocation8 + $0x13] sm:$0x1] %v1018_v58 }
 0x42a   :  { %2032 = vst.sshfl [vmem:[#allocation8 + $0x2b] sm:$0x1 pattern:$0x73625140] %v989_v60  ;;  %2373 = vmatpush3.msra.mxu1 %v3269_v0  ;;  %1281 = vmatprep.subr.mxu0 %v3272_v43  ;;  %v1040_v61 = vld [vmem:[#allocation3 + $0x68] sm:$0xff] }
 0x42b   :  { %2374 = vmatprep.subr.mxu1 %v3631_v48  ;;  %1282 = vmatpush1.msra.mxu0 %v3276_v52  ;;  %v1021_v49 = vcombine.high %v1017_v1, %v1017_v1  ;;  %1033 = vst [vmem:[#allocation8 + $0x1b] sm:$0x1] %v1020_v51  ;;  %1036 = vst [vmem:[#allocation8 + $0x33] sm:$0x1] %v1019_v54 }
 0x42c   :  { %2375 = vmatpush3.msra.mxu1 %v3279_v50  ;;  %1283 = vmatprep.subr.mxu0 %v3282_v2 }
 0x42d   :  { %2376 = vmatprep.subr.mxu1 %v3631_v48  ;;  %1284 = vmatpush1.msra.mxu0 %v3286_v14  ;;  %1037 = vst [vmem:[#allocation8 + $0x3b] sm:$0x1] %v1021_v49 }
 0x42e   :  { %2377 = vmatpush3.msra.mxu1 %v3289_v3  ;;  %1285 = vmatprep.subr.mxu0 %v3292_v47 }
 0x42f   :  { %2378 = vmatprep.subr.mxu1 %v3631_v48  ;;  %1286 = vmatpush1.msra.mxu0 %v3296_v4 }
 0x430   :  { %2379 = vmatpush3.msra.mxu1 %v3299_v16  ;;  %1287 = vmatprep.subr.mxu0 %v3302_v5 }
 0x431   :  { %2380 = vmatprep.subr.mxu1 %v3631_v48  ;;  %1288 = vmatpush1.msra.mxu0 %v3306_v6 }
 0x432   :  { %2381 = vmatpush3.msra.mxu1 %v3309_v7  ;;  %1289 = vmatprep.subr.mxu0 %v3312_v8 }
 0x433   :  { %2382 = vmatprep.subr.mxu1 %v3631_v48  ;;  %1290 = vmatpush1.msra.mxu0 %v3316_v9 }
 0x434   :  { %2383 = vmatpush3.msra.mxu1 %v3319_v11  ;;  %1291 = vmatprep.subr.mxu0 %v3322_v12 }
 0x435   :  { %2384 = vmatprep.subr.mxu1 %v3631_v48  ;;  %1292 = vmatpush1.msra.mxu0 %v3326_v13 }
 0x436   :  { %2385 = vmatpush3.msra.mxu1 %v3329_v15  ;;  %1293 = vmatprep.subr.mxu0 %v3332_v17 }
 0x437   :  { %2386 = vmatprep.subr.mxu1 %v3631_v48  ;;  %1294 = vmatpush1.msra.mxu0 %v3336_v18 }
 0x438   :  { %2387 = vmatpush3.msra.mxu1 %v3339_v19  ;;  %1295 = vmatprep.subr.mxu0 %v3342_v20 }
 0x439   :  { %2388 = vmatprep.subr.mxu1 %v3631_v48  ;;  %1296 = vmatpush1.msra.mxu0 %v3346_v21 }
 0x43a   :  { %2389 = vmatpush3.msra.mxu1 %v3349_v22  ;;  %1297 = vmatprep.subr.mxu0 %v3352_v23 }
 0x43b   :  { %2390 = vmatprep.subr.mxu1 %v3631_v48  ;;  %1298 = vmatpush1.msra.mxu0 %v3356_v24 }
 0x43c   :  { %2391 = vmatpush3.msra.mxu1 %v3359_v25  ;;  %1299 = vmatprep.subr.mxu0 %v3362_v26 }
 0x43d   :  { %2392 = vmatprep.subr.mxu1 %v3631_v48  ;;  %1300 = vmatpush1.msra.mxu0 %v3366_v27 }
 0x43e   :  { %2393 = vmatpush3.msra.mxu1 %v3369_v28  ;;  %1301 = vmatprep.subr.mxu0 %v3372_v29 }
 0x43f   :  { %2394 = vmatprep.subr.mxu1 %v3631_v48  ;;  %1302 = vmatpush1.msra.mxu0 %v3376_v30 }
 0x440   :  { %2395 = vmatpush3.msra.mxu1 %v3379_v31  ;;  %1303 = vmatprep.subr.mxu0 %v3382_v32 }
 0x441   :  { %2396 = vmatprep.subr.mxu1 %v3631_v48  ;;  %1304 = vmatpush1.msra.mxu0 %v3386_v33 }
 0x442   :  { %2397 = vmatpush3.msra.mxu1 %v3389_v34  ;;  %1305 = vmatprep.subr.mxu0 %v3392_v35  ;;  %v1041_v34 = vld [vmem:[#allocation3 + $0x70] sm:$0xff] }
 0x443   :  { %2398 = vmatprep.subr.mxu1 %v3631_v48  ;;  %1306 = vmatpush1.msra.mxu0 %v3396_v36 }
 0x444   :  { %1339 = vmatprep.mubr.f32.mxu0 %v3631_v48  ;;  %2399 = vmatpush3.msra.mxu1 %v3400_v38 }
 0x445   :  { %2400 = vmatprep.mubr.msk.f32.mxu1 %vm2706_vm0, %v3631_v48  ;;  %1508 = vmatprep.subr.mxu0 %v3227_v10 }
 0x446   :  { %2403 = vmatprep.subr.mxu1 %v3631_v48 }
 0x4e3   :  { %v1108_v45 = vpop.f32.mrf.mxu0  ;;  %v1179_v46 = vpop.f32.mrf.mxu1 }
 0x4e4   :  { %v1183_v55 = vadd.f32 %v1108_v45, %v1039_v39  ;;  %v1197_v10 = vadd.f32 %v2980_v62, %v1179_v46 }
 0x4e5   :  { %v2367_v60 = vpop.f32.mrf.mxu1  ;;  %v1110_v58 = vpop.f32.mrf.mxu0 }
 0x4e6   :  { %v2033_v40 = vmul.f32 -1.442695, %v1183_v55  ;;  %v1190_v1 = vadd.f32 %v1110_v58, %v1040_v61 }
 0x4e8   :  { %2524 = vpow2.f32 %v2033_v40  ;;  %v2034_v54 = vmul.f32 -1.442695, %v1190_v1 }
 0x4ea   :  { %2526 = vpow2.f32 %v2034_v54 }
 0x4f5   :  { %v2525_v51 = vpop.eup %2524 }
 0x4f6   :  { %v1187_v49 = vadd.f32 1.0, %v2525_v51 }
 0x4f7   :  { %v2527_v38 = vpop.eup %2526 }
 0x4f8   :  { %2528 = vrcp.f32 %v1187_v49  ;;  %v1194_v36 = vadd.f32 1.0, %v2527_v38 }
 0x4fa   :  { %2530 = vrcp.f32 %v1194_v36 }
 0x505   :  { %v2529_v35 = vpop.eup %2528 }
 0x506   :  { %v1198_v33 = vmul.f32 %v2529_v35, %v1197_v10 }
 0x507   :  { %v2531_v45 = vpop.eup %2530 }
 0x508   :  { %v1199_v39 = vadd.f32 %v1198_v33, %v1041_v34  ;;  %v1201_v55 = vsub.f32 1.0, %v2531_v45  ;;  %v1203_v61 = vmul.f32 %v2531_v45, %v3233_v37  ;;  %v3654_v45 = vld [vmem:[#allocation19_spill] sm:$0xff] }
 0x50a   :  { %2532 = vtanh.f32 %v1199_v39  ;;  %v3653_v39 = vld [vmem:[#allocation16_spill] sm:$0xff] }
 0x517   :  { %v2533_v60 = vpop.eup %2532 }
 0x518   :  { %v1202_v40 = vmul.f32 %v2533_v60, %v1201_v55  ;;  %v3655_v55 = vld [vmem:[#allocation17_spill] sm:$0xff]  ;;  %v3656_v60 = vld [vmem:[#allocation18_spill] sm:$0xff] }
 0x51a   :  { %v3409_v58 = vadd.f32 %v1203_v61, %v1202_v40  ;;  %v3657_v40 = vld [vmem:[#allocation20_spill] sm:$0xff]  ;;  %v3658_v61 = vld [vmem:[#allocation15_spill] sm:$0xff] }
 0x51c   :  { %v1206_v1 = vcombine.high %v3409_v58, %v3409_v58  ;;  %v1213_v62 = vrot.slane %v3409_v58, %v2983_v41  ;;  %1340 = vmatmul.mubr.f32.vlgmr.msra.gmra.mxu0 %v3409_v58  ;;  %2401 = vmatmul.mubr.f32.vlgmr.msra.gmra.mxu1 %v3409_v58 }
 0x51d   :  { %1509 = vmatpush1.msra.mxu0 %v3241_v42  ;;  %2404 = vmatpush3.msra.mxu1 %v3244_v44 }
 0x51e   :  { %v1220_v10 = vrot.slane %v1206_v1, %v2983_v41  ;;  %v1221_v33 = vcombine.high %v1213_v62, %v1213_v62  ;;  %v1229_v37 = vrot.slane %v1213_v62, %v2983_v41  ;;  %2035 = vst.sshfl [vmem:[#allocation8 + $0x4] sm:$0x1 pattern:$0x73625140] %v1213_v62  ;;  %1510 = vmatprep.subr.mxu0 %v3249_v57  ;;  %v1272_v1 = vld [vmem:[#allocation3 + $0x78] sm:$0xff] }
 0x51f   :  { %2405 = vmatprep.subr.mxu1 %v3631_v48  ;;  %1511 = vmatpush1.msra.mxu0 %v3253_v63 }
 0x520   :  { %2406 = vmatpush3.msra.mxu1 %v3256_v53  ;;  %v1222_v34 = vcombine.high %v1220_v10, %v1220_v10  ;;  %v1236_v35 = vrot.slane %v1220_v10, %v2983_v41  ;;  %v1243_v36 = vrot.slane %v1221_v33, %v2983_v41  ;;  %v1251_v38 = vcombine.high %v1229_v37, %v1229_v37 }
 0x521   :  { %2036 = vst.sshfl [vmem:[#allocation8 + $0xc] sm:$0x1 pattern:$0x73625140] %v1221_v33  ;;  %1512 = vmatprep.subr.mxu0 %v3261_v59  ;;  %2407 = vmatprep.subr.mxu1 %v3631_v48 }
 0x522   :  { %2037 = vst.sshfl [vmem:[#allocation8 + $0x24] sm:$0x1 pattern:$0x73625140] %v1220_v10  ;;  %1513 = vmatpush1.msra.mxu0 %v3265_v56  ;;  %v1250_v46 = vrot.slane %v1222_v34, %v2983_v41  ;;  %v1252_v54 = vcombine.high %v1236_v35, %v1236_v35  ;;  %v1253_v51 = vcombine.high %v1243_v36, %v1243_v36  ;;  %1265 = vst [vmem:[#allocation8 + $0x14] sm:$0x1] %v1251_v38 }
 0x523   :  { %2038 = vst.sshfl [vmem:[#allocation8 + $0x2c] sm:$0x1 pattern:$0x73625140] %v1222_v34  ;;  %2408 = vmatpush3.msra.mxu1 %v3269_v0  ;;  %1514 = vmatprep.subr.mxu0 %v3272_v43  ;;  %v1273_v35 = vld [vmem:[#allocation3 + $0x80] sm:$0xff] }
 0x524   :  { %2409 = vmatprep.subr.mxu1 %v3631_v48  ;;  %1515 = vmatpush1.msra.mxu0 %v3276_v52  ;;  %v1254_v49 = vcombine.high %v1250_v46, %v1250_v46  ;;  %1266 = vst [vmem:[#allocation8 + $0x1c] sm:$0x1] %v1253_v51  ;;  %1269 = vst [vmem:[#allocation8 + $0x34] sm:$0x1] %v1252_v54 }
 0x525   :  { %2410 = vmatpush3.msra.mxu1 %v3279_v50  ;;  %1516 = vmatprep.subr.mxu0 %v3282_v2 }
 0x526   :  { %2411 = vmatprep.subr.mxu1 %v3631_v48  ;;  %1517 = vmatpush1.msra.mxu0 %v3286_v14  ;;  %1270 = vst [vmem:[#allocation8 + $0x3c] sm:$0x1] %v1254_v49 }
 0x527   :  { %2412 = vmatpush3.msra.mxu1 %v3289_v3  ;;  %1518 = vmatprep.subr.mxu0 %v3292_v47 }
 0x528   :  { %2413 = vmatprep.subr.mxu1 %v3631_v48  ;;  %1519 = vmatpush1.msra.mxu0 %v3296_v4 }
 0x529   :  { %2414 = vmatpush3.msra.mxu1 %v3299_v16  ;;  %1520 = vmatprep.subr.mxu0 %v3302_v5 }
 0x52a   :  { %2415 = vmatprep.subr.mxu1 %v3631_v48  ;;  %1521 = vmatpush1.msra.mxu0 %v3306_v6 }
 0x52b   :  { %2416 = vmatpush3.msra.mxu1 %v3309_v7  ;;  %1522 = vmatprep.subr.mxu0 %v3312_v8 }
 0x52c   :  { %2417 = vmatprep.subr.mxu1 %v3631_v48  ;;  %1523 = vmatpush1.msra.mxu0 %v3316_v9 }
 0x52d   :  { %2418 = vmatpush3.msra.mxu1 %v3319_v11  ;;  %1524 = vmatprep.subr.mxu0 %v3322_v12 }
 0x52e   :  { %2419 = vmatprep.subr.mxu1 %v3631_v48  ;;  %1525 = vmatpush1.msra.mxu0 %v3326_v13 }
 0x52f   :  { %2420 = vmatpush3.msra.mxu1 %v3329_v15  ;;  %1526 = vmatprep.subr.mxu0 %v3332_v17 }
 0x530   :  { %2421 = vmatprep.subr.mxu1 %v3631_v48  ;;  %1527 = vmatpush1.msra.mxu0 %v3336_v18 }
 0x531   :  { %2422 = vmatpush3.msra.mxu1 %v3339_v19  ;;  %1528 = vmatprep.subr.mxu0 %v3342_v20 }
 0x532   :  { %2423 = vmatprep.subr.mxu1 %v3631_v48  ;;  %1529 = vmatpush1.msra.mxu0 %v3346_v21 }
 0x533   :  { %2424 = vmatpush3.msra.mxu1 %v3349_v22  ;;  %1530 = vmatprep.subr.mxu0 %v3352_v23 }
 0x534   :  { %2425 = vmatprep.subr.mxu1 %v3631_v48  ;;  %1531 = vmatpush1.msra.mxu0 %v3356_v24 }
 0x535   :  { %2426 = vmatpush3.msra.mxu1 %v3359_v25  ;;  %1532 = vmatprep.subr.mxu0 %v3362_v26 }
 0x536   :  { %2427 = vmatprep.subr.mxu1 %v3631_v48  ;;  %1533 = vmatpush1.msra.mxu0 %v3366_v27 }
 0x537   :  { %2428 = vmatpush3.msra.mxu1 %v3369_v28  ;;  %1534 = vmatprep.subr.mxu0 %v3372_v29 }
 0x538   :  { %2429 = vmatprep.subr.mxu1 %v3631_v48  ;;  %1535 = vmatpush1.msra.mxu0 %v3376_v30 }
 0x539   :  { %2430 = vmatpush3.msra.mxu1 %v3379_v31  ;;  %1536 = vmatprep.subr.mxu0 %v3382_v32 }
 0x53a   :  { %2431 = vmatprep.subr.mxu1 %v3631_v48  ;;  %1537 = vmatpush1.msra.mxu0 %v3653_v39 }
 0x53b   :  { %2432 = vmatpush3.msra.mxu1 %v3654_v45  ;;  %1538 = vmatprep.subr.mxu0 %v3655_v55 }
 0x53c   :  { %2433 = vmatprep.subr.mxu1 %v3631_v48  ;;  %1539 = vmatpush1.msra.mxu0 %v3656_v60 }
 0x53d   :  { %1572 = vmatprep.mubr.f32.mxu0 %v3631_v48  ;;  %2434 = vmatpush3.msra.mxu1 %v3657_v40 }
 0x53e   :  { %2435 = vmatprep.mubr.msk.f32.mxu1 %vm2706_vm0, %v3631_v48  ;;  %1741 = vmatprep.subr.mxu0 %v3658_v61  ;;  %v3492_v61 = vld [vmem:[%s3597_s2] ss:$0 sm:$0xff]  ;;  %s2708_s2 = smov [#allocation9]  }
 0x53f   :  { %2438 = vmatprep.subr.mxu1 %v3631_v48  ;;  %s1994_s29 = sshll.u32 %s2708_s2, 4  ;;  %s1995_s29 = int_to_ptr.vmem [resolvable:$true] %s1994_s29 }
 0x540   :  { %s2653_s30 = scalar_lea.vmem %s1995_s29, 128  ;;  %p2658_p11 = scmp.lt.s32.totalorder %s1995_s29, %s1995_s29 }
 0x541   :  { %p2654_p10 = scmp.ne.s32.totalorder %s1995_s29, %s2653_s30  ;;  %p2659_p12 = scmp.lt.s32.totalorder %s2653_s30, %s2653_s30 }
 0x543   :  { %p2660_p13 = por %p2659_p12, %p2658_p11 }
 0x545   :  { %p2661_p0 = pnand %p2660_p13, %p2654_p10 }
 0x5dc   :  { %v1341_v62 = vpop.f32.mrf.mxu0  ;;  %v1412_v10 = vpop.f32.mrf.mxu1 }
 0x5dd   :  { %v1416_v33 = vadd.f32 %v1341_v62, %v1272_v1  ;;  %v1430_v1 = vadd.f32 %v3492_v61, %v1412_v10 }
 0x5de   :  { %v2402_v37 = vpop.f32.mrf.mxu1  ;;  %v1343_v36 = vpop.f32.mrf.mxu0 }
 0x5df   :  { %v2039_v34 = vmul.f32 -1.442695, %v1416_v33  ;;  %v1423_v38 = vadd.f32 %v1343_v36, %v1273_v35  ;;  %v1274_v33 = vld [vmem:[#allocation3 + $0x88] sm:$0xff] }
 0x5e1   :  { %2534 = vpow2.f32 %v2039_v34  ;;  %v2040_v46 = vmul.f32 -1.442695, %v1423_v38 }
 0x5e3   :  { %2536 = vpow2.f32 %v2040_v46 }
 0x5ee   :  { %v2535_v54 = vpop.eup %2534 }
 0x5ef   :  { %v1420_v51 = vadd.f32 1.0, %v2535_v54 }
 0x5f0   :  { %v2537_v49 = vpop.eup %2536 }
 0x5f1   :  { %2538 = vrcp.f32 %v1420_v51  ;;  %v1427_v40 = vadd.f32 1.0, %v2537_v49 }
 0x5f3   :  { %2540 = vrcp.f32 %v1427_v40 }
 0x5fe   :  { %v2539_v62 = vpop.eup %2538 }
 0x5ff   :  { %v1431_v37 = vmul.f32 %v2539_v62, %v1430_v1 }
 0x600   :  { %v2541_v35 = vpop.eup %2540 }
 0x601   :  { %v1432_v34 = vadd.f32 %v1431_v37, %v1274_v33  ;;  %v1434_v36 = vsub.f32 1.0, %v2541_v35  ;;  %v1436_v54 = vmul.f32 %v2541_v35, %v3409_v58 }
 0x603   :  { %2542 = vtanh.f32 %v1432_v34 }
 0x610   :  { %v2543_v38 = vpop.eup %2542 }
 0x611   :  { %v1435_v46 = vmul.f32 %v2543_v38, %v1434_v36  ;;  %v1739_v38 = vld [vmem:[#allocation3 + $0xb0] sm:$0xff] }
 0x613   :  { %v3496_v51 = vadd.f32 %v1436_v54, %v1435_v46 }
 0x615   :  { %v1439_v49 = vcombine.high %v3496_v51, %v3496_v51  ;;  %v1446_v10 = vrot.slane %v3496_v51, %v2983_v41  ;;  %1573 = vmatmul.mubr.f32.vlgmr.msra.gmra.mxu0 %v3496_v51  ;;  %2436 = vmatmul.mubr.f32.vlgmr.msra.gmra.mxu1 %v3496_v51 }
 0x616   :  { %1742 = vmatpush1.msra.mxu0 %v3241_v42  ;;  %2439 = vmatpush3.msra.mxu1 %v3244_v44 }
 0x617   :  { %v1453_v40 = vrot.slane %v1439_v49, %v2983_v41  ;;  %v1454_v1 = vcombine.high %v1446_v10, %v1446_v10  ;;  %v1462_v58 = vrot.slane %v1446_v10, %v2983_v41  ;;  %2041 = vst.sshfl [vmem:[#allocation8 + $0x5] sm:$0x1 pattern:$0x73625140] %v1446_v10  ;;  %1743 = vmatprep.subr.mxu0 %v3249_v57 }
 0x618   :  { %2440 = vmatprep.subr.mxu1 %v3631_v48  ;;  %1744 = vmatpush1.msra.mxu0 %v3253_v63 }
 0x619   :  { %2441 = vmatpush3.msra.mxu1 %v3256_v53  ;;  %v1455_v62 = vcombine.high %v1453_v40, %v1453_v40  ;;  %v1469_v33 = vrot.slane %v1453_v40, %v2983_v41  ;;  %v1476_v42 = vrot.slane %v1454_v1, %v2983_v41  ;;  %v1484_v44 = vcombine.high %v1462_v58, %v1462_v58 }
 0x61a   :  { %2042 = vst.sshfl [vmem:[#allocation8 + $0xd] sm:$0x1 pattern:$0x73625140] %v1454_v1  ;;  %1745 = vmatprep.subr.mxu0 %v3261_v59  ;;  %2442 = vmatprep.subr.mxu1 %v3631_v48  ;;  %v3659_v59 = vld [vmem:[#allocation20_spill] sm:$0xff] }
 0x61b   :  { %2043 = vst.sshfl [vmem:[#allocation8 + $0x25] sm:$0x1 pattern:$0x73625140] %v1453_v40  ;;  %1746 = vmatpush1.msra.mxu0 %v3265_v56  ;;  %v1483_v57 = vrot.slane %v1455_v62, %v2983_v41  ;;  %v1485_v37 = vcombine.high %v1469_v33, %v1469_v33  ;;  %v1486_v63 = vcombine.high %v1476_v42, %v1476_v42  ;;  %1498 = vst [vmem:[#allocation8 + $0x15] sm:$0x1] %v1484_v44 }
 0x61c   :  { %2044 = vst.sshfl [vmem:[#allocation8 + $0x2d] sm:$0x1 pattern:$0x73625140] %v1455_v62  ;;  %2443 = vmatpush3.msra.mxu1 %v3269_v0  ;;  %1747 = vmatprep.subr.mxu0 %v3272_v43  ;;  %v1505_v56 = vld [vmem:[#allocation3 + $0x90] sm:$0xff]  ;;  %v1740_v33 = vld [vmem:[#allocation3 + $0xb8] sm:$0xff] }
 0x61d   :  { %2444 = vmatprep.subr.mxu1 %v3631_v48  ;;  %1748 = vmatpush1.msra.mxu0 %v3276_v52  ;;  %v1487_v53 = vcombine.high %v1483_v57, %v1483_v57  ;;  %1499 = vst [vmem:[#allocation8 + $0x1d] sm:$0x1] %v1486_v63  ;;  %1502 = vst [vmem:[#allocation8 + $0x35] sm:$0x1] %v1485_v37 }
 0x61e   :  { %2445 = vmatpush3.msra.mxu1 %v3279_v50  ;;  %1749 = vmatprep.subr.mxu0 %v3282_v2 }
 0x61f   :  { %2446 = vmatprep.subr.mxu1 %v3631_v48  ;;  %1750 = vmatpush1.msra.mxu0 %v3286_v14  ;;  %1503 = vst [vmem:[#allocation8 + $0x3d] sm:$0x1] %v1487_v53  ;;  %v1506_v14 = vld [vmem:[#allocation3 + $0x98] sm:$0xff] }
 0x620   :  { %2447 = vmatpush3.msra.mxu1 %v3289_v3  ;;  %1751 = vmatprep.subr.mxu0 %v3292_v47 }
 0x621   :  { %2448 = vmatprep.subr.mxu1 %v3631_v48  ;;  %1752 = vmatpush1.msra.mxu0 %v3296_v4 }
 0x622   :  { %2449 = vmatpush3.msra.mxu1 %v3299_v16  ;;  %1753 = vmatprep.subr.mxu0 %v3302_v5 }
 0x623   :  { %2450 = vmatprep.subr.mxu1 %v3631_v48  ;;  %1754 = vmatpush1.msra.mxu0 %v3306_v6 }
 0x624   :  { %2451 = vmatpush3.msra.mxu1 %v3309_v7  ;;  %1755 = vmatprep.subr.mxu0 %v3312_v8 }
 0x625   :  { %2452 = vmatprep.subr.mxu1 %v3631_v48  ;;  %1756 = vmatpush1.msra.mxu0 %v3316_v9  ;;  %v1507_v9 = vld [vmem:[#allocation3 + $0xa0] sm:$0xff] }
 0x626   :  { %2453 = vmatpush3.msra.mxu1 %v3319_v11  ;;  %1757 = vmatprep.subr.mxu0 %v3322_v12 }
 0x627   :  { %2454 = vmatprep.subr.mxu1 %v3631_v48  ;;  %1758 = vmatpush1.msra.mxu0 %v3326_v13 }
 0x628   :  { %2455 = vmatpush3.msra.mxu1 %v3329_v15  ;;  %1759 = vmatprep.subr.mxu0 %v3332_v17 }
 0x629   :  { %2456 = vmatprep.subr.mxu1 %v3631_v48  ;;  %1760 = vmatpush1.msra.mxu0 %v3336_v18 }
 0x62a   :  { %2457 = vmatpush3.msra.mxu1 %v3339_v19  ;;  %1761 = vmatprep.subr.mxu0 %v3342_v20 }
 0x62b   :  { %2458 = vmatprep.subr.mxu1 %v3631_v48  ;;  %1762 = vmatpush1.msra.mxu0 %v3346_v21 }
 0x62c   :  { %2459 = vmatpush3.msra.mxu1 %v3349_v22  ;;  %1763 = vmatprep.subr.mxu0 %v3352_v23 }
 0x62d   :  { %2460 = vmatprep.subr.mxu1 %v3631_v48  ;;  %1764 = vmatpush1.msra.mxu0 %v3356_v24 }
 0x62e   :  { %2461 = vmatpush3.msra.mxu1 %v3359_v25  ;;  %1765 = vmatprep.subr.mxu0 %v3362_v26 }
 0x62f   :  { %2462 = vmatprep.subr.mxu1 %v3631_v48  ;;  %1766 = vmatpush1.msra.mxu0 %v3366_v27 }
 0x630   :  { %2463 = vmatpush3.msra.mxu1 %v3369_v28  ;;  %1767 = vmatprep.subr.mxu0 %v3372_v29 }
 0x631   :  { %2464 = vmatprep.subr.mxu1 %v3631_v48  ;;  %1768 = vmatpush1.msra.mxu0 %v3376_v30 }
 0x632   :  { %2465 = vmatpush3.msra.mxu1 %v3379_v31  ;;  %1769 = vmatprep.subr.mxu0 %v3382_v32 }
 0x633   :  { %2466 = vmatprep.subr.mxu1 %v3631_v48  ;;  %1770 = vmatpush1.msra.mxu0 %v3653_v39 }
 0x634   :  { %2467 = vmatpush3.msra.mxu1 %v3654_v45  ;;  %1771 = vmatprep.subr.mxu0 %v3655_v55  ;;  %v1738_v45 = vld [vmem:[#allocation3 + $0xa8] sm:$0xff] }
 0x635   :  { %2468 = vmatprep.subr.mxu1 %v3631_v48  ;;  %1772 = vmatpush1.msra.mxu0 %v3656_v60 }
 0x636   :  { %1805 = vmatprep.mubr.f32.mxu0 %v3631_v48  ;;  %2469 = vmatpush3.msra.mxu1 %v3659_v59 }
 0x637   :  { %2470 = vmatprep.mubr.msk.f32.mxu1 %vm2706_vm0, %v3631_v48 }
 0x6d5   :  { %v1574_v0 = vpop.f32.mrf.mxu0  ;;  %v1645_v43 = vpop.f32.mrf.mxu1 }
 0x6d6   :  { %v1649_v52 = vadd.f32 %v1574_v0, %v1505_v56  ;;  %v1663_v8 = vadd.f32 %v3492_v61, %v1645_v43 }
 0x6d7   :  { %v2437_v50 = vpop.f32.mrf.mxu1  ;;  %v1576_v3 = vpop.f32.mrf.mxu0 }
 0x6d8   :  { %v2045_v2 = vmul.f32 -1.442695, %v1649_v52  ;;  %v1656_v47 = vadd.f32 %v1576_v3, %v1506_v14 }
 0x6da   :  { %2544 = vpow2.f32 %v2045_v2  ;;  %v2046_v4 = vmul.f32 -1.442695, %v1656_v47 }
 0x6dc   :  { %2546 = vpow2.f32 %v2046_v4 }
 0x6e7   :  { %v2545_v16 = vpop.eup %2544 }
 0x6e8   :  { %v1653_v5 = vadd.f32 1.0, %v2545_v16 }
 0x6e9   :  { %v2547_v6 = vpop.eup %2546 }
 0x6ea   :  { %2548 = vrcp.f32 %v1653_v5  ;;  %v1660_v7 = vadd.f32 1.0, %v2547_v6 }
 0x6ec   :  { %2550 = vrcp.f32 %v1660_v7 }
 0x6f7   :  { %v2549_v48 = vpop.eup %2548 }
 0x6f8   :  { %v1664_v11 = vmul.f32 %v2549_v48, %v1663_v8 }
 0x6f9   :  { %v2551_v13 = vpop.eup %2550 }
 0x6fa   :  { %v1665_v12 = vadd.f32 %v1664_v11, %v1507_v9  ;;  %v1667_v15 = vsub.f32 1.0, %v2551_v13  ;;  %v1669_v19 = vmul.f32 %v2551_v13, %v3496_v51 }
 0x6fc   :  { %2552 = vtanh.f32 %v1665_v12 }
 0x709   :  { %v2553_v17 = vpop.eup %2552 }
 0x70a   :  { %v1668_v18 = vmul.f32 %v2553_v17, %v1667_v15 }
 0x70c   :  { %v1670_v20 = vadd.f32 %v1669_v19, %v1668_v18 }
 0x70e   :  { %v1672_v21 = vcombine.high %v1670_v20, %v1670_v20  ;;  %v1679_v22 = vrot.slane %v1670_v20, %v2983_v41  ;;  %1806 = vmatmul.mubr.f32.vlgmr.msra.gmra.mxu0 %v1670_v20  ;;  %2471 = vmatmul.mubr.f32.vlgmr.msra.gmra.mxu1 %v1670_v20 }
 0x710   :  { %v1686_v23 = vrot.slane %v1672_v21, %v2983_v41  ;;  %v1687_v24 = vcombine.high %v1679_v22, %v1679_v22  ;;  %v1695_v25 = vrot.slane %v1679_v22, %v2983_v41  ;;  %2047 = vst.sshfl [vmem:[#allocation8 + $0x6] sm:$0x1 pattern:$0x73625140] %v1679_v22 }
 0x712   :  { %v1688_v26 = vcombine.high %v1686_v23, %v1686_v23  ;;  %v1702_v27 = vrot.slane %v1686_v23, %v2983_v41  ;;  %v1709_v28 = vrot.slane %v1687_v24, %v2983_v41  ;;  %v1717_v29 = vcombine.high %v1695_v25, %v1695_v25  ;;  %2048 = vst.sshfl [vmem:[#allocation8 + $0xe] sm:$0x1 pattern:$0x73625140] %v1687_v24 }
 0x713   :  { %2049 = vst.sshfl [vmem:[#allocation8 + $0x26] sm:$0x1 pattern:$0x73625140] %v1686_v23 }
 0x714   :  { %v1716_v30 = vrot.slane %v1688_v26, %v2983_v41  ;;  %v1718_v31 = vcombine.high %v1702_v27, %v1702_v27  ;;  %v1719_v32 = vcombine.high %v1709_v28, %v1709_v28  ;;  %1731 = vst [vmem:[#allocation8 + $0x16] sm:$0x1] %v1717_v29  ;;  %2050 = vst.sshfl [vmem:[#allocation8 + $0x2e] sm:$0x1 pattern:$0x73625140] %v1688_v26 }
 0x716   :  { %v1720_v39 = vcombine.high %v1716_v30, %v1716_v30  ;;  %1732 = vst [vmem:[#allocation8 + $0x1e] sm:$0x1] %v1719_v32  ;;  %1735 = vst [vmem:[#allocation8 + $0x36] sm:$0x1] %v1718_v31 }
 0x718   :  { %1736 = vst [vmem:[#allocation8 + $0x3e] sm:$0x1] %v1720_v39 }
 0x7ce   :  { %v1807_v55 = vpop.f32.mrf.mxu0  ;;  %v1878_v60 = vpop.f32.mrf.mxu1 }
 0x7cf   :  { %v1882_v34 = vadd.f32 %v1807_v55, %v1738_v45  ;;  %v1896_v58 = vadd.f32 %v3492_v61, %v1878_v60 }
 0x7d0   :  { %v2472_v35 = vpop.f32.mrf.mxu1  ;;  %v1809_v46 = vpop.f32.mrf.mxu0 }
 0x7d1   :  { %v2051_v36 = vmul.f32 -1.442695, %v1882_v34  ;;  %v1889_v54 = vadd.f32 %v1809_v46, %v1739_v38 }
 0x7d3   :  { %2554 = vpow2.f32 %v2051_v36  ;;  %v2052_v51 = vmul.f32 -1.442695, %v1889_v54 }
 0x7d5   :  { %2556 = vpow2.f32 %v2052_v51 }
 0x7e0   :  { %v2555_v49 = vpop.eup %2554 }
 0x7e1   :  { %v1886_v10 = vadd.f32 1.0, %v2555_v49 }
 0x7e2   :  { %v2557_v40 = vpop.eup %2556 }
 0x7e3   :  { %2558 = vrcp.f32 %v1886_v10  ;;  %v1893_v1 = vadd.f32 1.0, %v2557_v40 }
 0x7e5   :  { %2560 = vrcp.f32 %v1893_v1 }
 0x7f0   :  { %v2559_v62 = vpop.eup %2558 }
 0x7f1   :  { %v1897_v42 = vmul.f32 %v2559_v62, %v1896_v58 }
 0x7f2   :  { %v2561_v57 = vpop.eup %2560 }
 0x7f3   :  { %v1898_v44 = vadd.f32 %v1897_v42, %v1740_v33  ;;  %v1900_v37 = vsub.f32 1.0, %v2561_v57  ;;  %v1902_v59 = vmul.f32 %v2561_v57, %v1670_v20 }
 0x7f5   :  { %2562 = vtanh.f32 %v1898_v44 }
 0x802   :  { %v2563_v63 = vpop.eup %2562 }
 0x803   :  { %v1901_v53 = vmul.f32 %v2563_v63, %v1900_v37 }
 0x805   :  { %v1903_v56 = vadd.f32 %v1902_v59, %v1901_v53 }
 0x807   :  { %v1905_v0 = vcombine.high %v1903_v56, %v1903_v56  ;;  %v1912_v43 = vrot.slane %v1903_v56, %v2983_v41  ;;  %1975 = vst [vmem:[#allocation9] sm:$0xff] %v1903_v56 }
 0x808   :  { %2664 = shalt.err (!%p2661_p0)
}
 0x809   :  { %1997 = dma.vmem_to_hbm [thread:$0]  %s1995_s29, 128, %s3599_s4, [#allocation10]   ;;  %v1919_v61 = vrot.slane %v1905_v0, %v2983_v41  ;;  %v1920_v52 = vcombine.high %v1912_v43, %v1912_v43  ;;  %v1928_v50 = vrot.slane %v1912_v43, %v2983_v41  ;;  %2053 = vst.sshfl [vmem:[#allocation8 + $0x7] sm:$0x1 pattern:$0x73625140] %v1912_v43 }
 0x80a   :  { %s2709_s7 = smov [#allocation8]  }
 0x80b   :  { %v1921_v2 = vcombine.high %v1919_v61, %v1919_v61  ;;  %v1935_v14 = vrot.slane %v1919_v61, %v2983_v41  ;;  %v1942_v3 = vrot.slane %v1920_v52, %v2983_v41  ;;  %v1950_v47 = vcombine.high %v1928_v50, %v1928_v50  ;;  %2054 = vst.sshfl [vmem:[#allocation8 + $0xf] sm:$0x1 pattern:$0x73625140] %v1920_v52  ;;  %s1981_s8 = sshll.u32 %s2709_s7, 4  ;;  %s1982_s8 = int_to_ptr.vmem [resolvable:$true] %s1981_s8 }
 0x80c   :  { %2055 = vst.sshfl [vmem:[#allocation8 + $0x27] sm:$0x1 pattern:$0x73625140] %v1919_v61  ;;  %s2673_s4 = scalar_lea.vmem %s1982_s8, 1024  ;;  %p2678_p2 = scmp.lt.s32.totalorder %s1982_s8, %s1982_s8 }
 0x80d   :  { %v1949_v4 = vrot.slane %v1921_v2, %v2983_v41  ;;  %v1951_v16 = vcombine.high %v1935_v14, %v1935_v14  ;;  %v1952_v5 = vcombine.high %v1942_v3, %v1942_v3  ;;  %1964 = vst [vmem:[#allocation8 + $0x17] sm:$0x1] %v1950_v47  ;;  %2056 = vst.sshfl [vmem:[#allocation8 + $0x2f] sm:$0x1 pattern:$0x73625140] %v1921_v2  ;;  %p2674_p1 = scmp.ne.s32.totalorder %s1982_s8, %s2673_s4  ;;  %p2679_p3 = scmp.lt.s32.totalorder %s2673_s4, %s2673_s4 }
 0x80f   :  { %v1953_v6 = vcombine.high %v1949_v4, %v1949_v4  ;;  %1965 = vst [vmem:[#allocation8 + $0x1f] sm:$0x1] %v1952_v5  ;;  %1968 = vst [vmem:[#allocation8 + $0x37] sm:$0x1] %v1951_v16  ;;  %p2680_p4 = por %p2679_p3, %p2678_p2 }
 0x811   :  { %1969 = vst [vmem:[#allocation8 + $0x3f] sm:$0x1] %v1953_v6  ;;  %p2681_p5 = pnand %p2680_p4, %p2674_p1 }
 0x813   :  { %2684 = shalt.err (!%p2681_p5)
}
 0x814   :  { %s2710_s9 = smov 128   ;;  %s2711_s10 = smov 8  }
 0x815   :  { %1987 = dma.vmem_to_hbm [thread:$0]  %s1982_s8, 1024, %s3598_s3, [#allocation5], %s2710_s9, %s2710_s9, %s2711_s10  }
 0x816   :  { %2697 = dma.done.wait [#allocation5], 1024  }
 0x817   :  { %2698 = vsyncadd [#allocation5], 4294966272 }
 0x818   :  { %2699 = dma.done.wait [#allocation10], 128  }
 0x819   :  { %2700 = vsyncadd [#allocation10], 4294967168 }
 0x81a   :  { %2004 = vsyncpa [#allocation4], 1 }
 0x81b   :  { %2005 = vsyncpa [#allocation7], 1 }
 0x81c   :  { %2006 = vsyncpa [#allocation5], 1 }
 0x81d   :  { %2007 = vsyncpa [#allocation10], 1 }

</bundles_post_ra>
